<compile_context>
chip_gen: v7x
topology: tpu7x:2x2x1
jax: 0.10.0
libtpu: 0.0.40
codegen_flags: <defaults>
</compile_context>

<pallas_src>
import functools

import jax
import jax.numpy as jnp
from jax import lax
from jax.experimental import pallas as pl
from jax.experimental.pallas import tpu as pltpu


def _conv2d_kernel(x_ref, w_ref, b_ref, o_ref, *, KH, KW, stride, dilation,
                   TH, Wo, Cin, activation):
    # x_ref: (Cin, Hp, Wp)        padded input, one batch element (N squeezed)
    # w_ref: (Cout, KH*KW*Cin)    im2col-ordered weights
    # b_ref: (Cout, 1)            bias (f32)
    # o_ref: (Cout, TH*Wo)        lane-dense output tile (TH output rows)
    sh, sw = stride
    dh, dw = dilation

    h_base = pl.program_id(1) * (TH * sh)
    if (TH * sh) % 8 == 0:
        h_base = pl.multiple_of(h_base, 8)

    # im2col: one (Cin, TH, Wo) slab per tap, flattened to (Cin, TH*Wo) and
    # stacked along the contraction axis.  Static Python loop -> fully
    # unrolled; weights/bias are loaded exactly once.
    slabs = []
    for kh in range(KH):
        for kw in range(KW):
            h0 = h_base + kh * dh
            hsl = pl.ds(h0, TH) if sh == 1 else pl.ds(h0, TH, sh)
            wsl = pl.ds(kw * dw, Wo) if sw == 1 else pl.ds(kw * dw, Wo, sw)
            slab = x_ref[:, hsl, wsl]                 # (Cin, TH, Wo)
            slabs.append(slab.reshape(Cin, TH * Wo))
    patches = jnp.concatenate(slabs, axis=0)          # (KH*KW*Cin, TH*Wo)

    # Single MXU matmul for the whole block; f32 accumulation.
    acc = jnp.dot(w_ref[...], patches, preferred_element_type=jnp.float32)
    acc = acc + b_ref[...].astype(jnp.float32)        # broadcast over lanes

    if activation == "relu":
        acc = jnp.maximum(acc, 0.0)
    elif activation == "sigmoid":
        acc = jax.nn.sigmoid(acc)
    # activation is None -> identity (matches out_ac=None in the module)

    o_ref[...] = acc.astype(o_ref.dtype)              # one unmasked store


def _pick_ho_tile(Ho, Wo, Cout, itemsize, budget_bytes=4 << 20):
    """Largest Ho tile that keeps the output block lane-legal and small."""
    candidates = []
    for d in range(1, Ho + 1):
        if Ho % d != 0:
            continue
        lane_ok = (d == Ho) or ((d * Wo) % 128 == 0)
        vmem_ok = 2 * Cout * d * Wo * itemsize <= budget_bytes  # double-buffered
        if lane_ok and vmem_ok:
            candidates.append(d)
    return max(candidates) if candidates else Ho


def speech_conv(x_nchw, weight_oihw, bias, *, stride, padding, dilation=(1, 1),
                activation=None, compute_dtype=None):
    """Equivalent of SpeechConv.forward: Conv2d(bias=True) + optional activation."""
    N, Cin, H, W = x_nchw.shape
    Cout, Cin_w, KH, KW = weight_oihw.shape
    assert Cin == Cin_w
    sh, sw = stride
    ph, pw = padding
    dh, dw = dilation
    Ho = (H + 2 * ph - dh * (KH - 1) - 1) // sh + 1
    Wo = (W + 2 * pw - dw * (KW - 1) - 1) // sw + 1

    out_dtype = x_nchw.dtype
    if compute_dtype is not None:  # e.g. jnp.bfloat16 on v6e/v7x
        x_nchw = x_nchw.astype(compute_dtype)
        weight_oihw = weight_oihw.astype(compute_dtype)

    # Glue: spatial zero-padding only (no layout transposes).
    x_pad = jnp.pad(x_nchw, ((0, 0), (0, 0), (ph, ph), (pw, pw)))
    Hp, Wp = H + 2 * ph, W + 2 * pw

    # im2col weight layout (Cout, KH*KW*Cin); K ordered (kh, kw, cin) to match
    # the in-kernel patch stacking.  Weight tensor is tiny -> negligible.
    w2d = jnp.transpose(weight_oihw, (0, 2, 3, 1)).reshape(Cout, KH * KW * Cin)
    b2 = bias.reshape(Cout, 1).astype(jnp.float32)

    TH = _pick_ho_tile(Ho, Wo, Cout, jnp.dtype(out_dtype).itemsize)
    n_t = Ho // TH

    kernel = functools.partial(
        _conv2d_kernel, KH=KH, KW=KW, stride=(sh, sw), dilation=(dh, dw),
        TH=TH, Wo=Wo, Cin=Cin, activation=activation)

    out_flat = pl.pallas_call(
        kernel,
        out_shape=jax.ShapeDtypeStruct((N, Cout, Ho * Wo), out_dtype),
        grid_spec=pltpu.PrefetchScalarGridSpec(
            num_scalar_prefetch=0,
            grid=(N, n_t),
            in_specs=[
                # Full padded frame per batch element; same block for every Ho
                # tile of a batch -> fetched once, reused across t.
                pl.BlockSpec((pl.Squeezed(), Cin, Hp, Wp),
                             lambda n, t: (n, 0, 0, 0)),
                pl.BlockSpec((Cout, KH * KW * Cin), lambda n, t: (0, 0)),
                pl.BlockSpec((Cout, 1), lambda n, t: (0, 0)),
            ],
            out_specs=pl.BlockSpec((pl.Squeezed(), Cout, TH * Wo),
                                   lambda n, t: (n, 0, t)),
        ),
        compiler_params=pltpu.CompilerParams(
            dimension_semantics=("parallel", "parallel"),
            vmem_limit_bytes=48 * 1024 * 1024,  # safe on v5e/v6e/v7x
        ),
    )(x_pad, w2d, b2)

    # Free reshape of the contiguous flat spatial axis back to (Ho, Wo).
    return out_flat.reshape(N, Cout, Ho, Wo)


if __name__ == "__main__":
    key = jax.random.PRNGKey(0)
    kx, kwt, kb = jax.random.split(key, 3)

    # SpeechConv(in_channels=4, out_channels=8, kernel_size=3, stride=1,
    #            padding=1, dilation=1, out_ac=ReLU)
    N, Cin, H, W = 2, 4, 16, 16
    Cout, KH, KW = 8, 3, 3
    stride, padding, dilation = (1, 1), (1, 1), (1, 1)

    x = jax.random.normal(kx, (N, Cin, H, W), jnp.float32)
    weight = jax.random.normal(kwt, (Cout, Cin, KH, KW), jnp.float32) * 0.1
    bias = jax.random.normal(kb, (Cout,), jnp.float32) * 0.1

    out = speech_conv(x, weight, bias, stride=stride, padding=padding,
                      dilation=dilation, activation="relu")
    out = jax.block_until_ready(out)

    # Pure-JAX reference (semantics of nn.Conv2d NCHW + bias + ReLU).
    ref = lax.conv_general_dilated(
        x, weight, window_strides=stride,
        padding=((padding[0], padding[0]), (padding[1], padding[1])),
        rhs_dilation=dilation,
        dimension_numbers=("NCHW", "OIHW", "NCHW"))
    ref = jnp.maximum(ref + bias.reshape(1, Cout, 1, 1), 0.0)

    assert out.shape == (N, Cout, H, W)
    assert jnp.max(jnp.abs(out - ref)) < 1e-3, "mismatch vs reference conv"
    print("KERNEL_OK")
</pallas_src>

<mosaic_0001>
module attributes {stable_mosaic.version = 11 : i64} {
  func.func @_conv2d_kernel(%arg0: i32, %arg1: i32, %arg2: memref<1x4x18x18xf32, #tpu.memory_space<vmem>>, %arg3: memref<8x36xf32, #tpu.memory_space<vmem>>, %arg4: memref<8x1xf32, #tpu.memory_space<vmem>>, %arg5: memref<1x8x256xf32, #tpu.memory_space<vmem>>) attributes {dimension_semantics = [#tpu.dimension_semantics<parallel>, #tpu.dimension_semantics<parallel>], iteration_bounds = array<i64: 2, 1>, scalar_prefetch = 0 : i64, scratch_operands = 0 : i64, tpu.core_type = #tpu.core_type<tc>, window_params = [{transform_indices = @transform_0, window_bounds = array<i64: 1, 4, 18, 18>}, {pipeline_mode = #tpu.pipeline_mode<synchronous>, transform_indices = @transform_1, window_bounds = array<i64: 8, 36>}, {pipeline_mode = #tpu.pipeline_mode<synchronous>, transform_indices = @transform_2, window_bounds = array<i64: 8, 1>}, {transform_indices = @transform_3, window_bounds = array<i64: 1, 8, 256>}]} {
    %c16_i32 = arith.constant 16 : i32
    %0 = arith.muli %arg1, %c16_i32 : i32
    %1 = tpu.assume_multiple %0, 8 : i32
    %c0_i32 = arith.constant 0 : i32
    %2 = arith.addi %1, %c0_i32 : i32
    %c0 = arith.constant 0 : index
    %c0_0 = arith.constant 0 : index
    %3 = arith.index_cast %2 : i32 to index
    %c0_1 = arith.constant 0 : index
    %4 = vector.load %arg2[%c0, %c0_0, %3, %c0_1] : memref<1x4x18x18xf32, #tpu.memory_space<vmem>>, vector<1x4x16x16xf32>
    %5 = vector.shape_cast %4 : vector<1x4x16x16xf32> to vector<4x16x16xf32>
    %6 = vector.shape_cast %5 : vector<4x16x16xf32> to vector<4x256xf32>
    %c0_i32_2 = arith.constant 0 : i32
    %7 = arith.addi %1, %c0_i32_2 : i32
    %c0_3 = arith.constant 0 : index
    %c0_4 = arith.constant 0 : index
    %8 = arith.index_cast %7 : i32 to index
    %c1 = arith.constant 1 : index
    %9 = vector.load %arg2[%c0_3, %c0_4, %8, %c1] : memref<1x4x18x18xf32, #tpu.memory_space<vmem>>, vector<1x4x16x16xf32>
    %10 = vector.shape_cast %9 : vector<1x4x16x16xf32> to vector<4x16x16xf32>
    %11 = vector.shape_cast %10 : vector<4x16x16xf32> to vector<4x256xf32>
    %c0_i32_5 = arith.constant 0 : i32
    %12 = arith.addi %1, %c0_i32_5 : i32
    %c0_6 = arith.constant 0 : index
    %c0_7 = arith.constant 0 : index
    %13 = arith.index_cast %12 : i32 to index
    %c2 = arith.constant 2 : index
    %14 = vector.load %arg2[%c0_6, %c0_7, %13, %c2] : memref<1x4x18x18xf32, #tpu.memory_space<vmem>>, vector<1x4x16x16xf32>
    %15 = vector.shape_cast %14 : vector<1x4x16x16xf32> to vector<4x16x16xf32>
    %16 = vector.shape_cast %15 : vector<4x16x16xf32> to vector<4x256xf32>
    %c1_i32 = arith.constant 1 : i32
    %17 = arith.addi %1, %c1_i32 : i32
    %c0_8 = arith.constant 0 : index
    %c0_9 = arith.constant 0 : index
    %18 = arith.index_cast %17 : i32 to index
    %c0_10 = arith.constant 0 : index
    %19 = vector.load %arg2[%c0_8, %c0_9, %18, %c0_10] : memref<1x4x18x18xf32, #tpu.memory_space<vmem>>, vector<1x4x16x16xf32>
    %20 = vector.shape_cast %19 : vector<1x4x16x16xf32> to vector<4x16x16xf32>
    %21 = vector.shape_cast %20 : vector<4x16x16xf32> to vector<4x256xf32>
    %c1_i32_11 = arith.constant 1 : i32
    %22 = arith.addi %1, %c1_i32_11 : i32
    %c0_12 = arith.constant 0 : index
    %c0_13 = arith.constant 0 : index
    %23 = arith.index_cast %22 : i32 to index
    %c1_14 = arith.constant 1 : index
    %24 = vector.load %arg2[%c0_12, %c0_13, %23, %c1_14] : memref<1x4x18x18xf32, #tpu.memory_space<vmem>>, vector<1x4x16x16xf32>
    %25 = vector.shape_cast %24 : vector<1x4x16x16xf32> to vector<4x16x16xf32>
    %26 = vector.shape_cast %25 : vector<4x16x16xf32> to vector<4x256xf32>
    %c1_i32_15 = arith.constant 1 : i32
    %27 = arith.addi %1, %c1_i32_15 : i32
    %c0_16 = arith.constant 0 : index
    %c0_17 = arith.constant 0 : index
    %28 = arith.index_cast %27 : i32 to index
    %c2_18 = arith.constant 2 : index
    %29 = vector.load %arg2[%c0_16, %c0_17, %28, %c2_18] : memref<1x4x18x18xf32, #tpu.memory_space<vmem>>, vector<1x4x16x16xf32>
    %30 = vector.shape_cast %29 : vector<1x4x16x16xf32> to vector<4x16x16xf32>
    %31 = vector.shape_cast %30 : vector<4x16x16xf32> to vector<4x256xf32>
    %c2_i32 = arith.constant 2 : i32
    %32 = arith.addi %1, %c2_i32 : i32
    %c0_19 = arith.constant 0 : index
    %c0_20 = arith.constant 0 : index
    %33 = arith.index_cast %32 : i32 to index
    %c0_21 = arith.constant 0 : index
    %34 = vector.load %arg2[%c0_19, %c0_20, %33, %c0_21] : memref<1x4x18x18xf32, #tpu.memory_space<vmem>>, vector<1x4x16x16xf32>
    %35 = vector.shape_cast %34 : vector<1x4x16x16xf32> to vector<4x16x16xf32>
    %36 = vector.shape_cast %35 : vector<4x16x16xf32> to vector<4x256xf32>
    %c2_i32_22 = arith.constant 2 : i32
    %37 = arith.addi %1, %c2_i32_22 : i32
    %c0_23 = arith.constant 0 : index
    %c0_24 = arith.constant 0 : index
    %38 = arith.index_cast %37 : i32 to index
    %c1_25 = arith.constant 1 : index
    %39 = vector.load %arg2[%c0_23, %c0_24, %38, %c1_25] : memref<1x4x18x18xf32, #tpu.memory_space<vmem>>, vector<1x4x16x16xf32>
    %40 = vector.shape_cast %39 : vector<1x4x16x16xf32> to vector<4x16x16xf32>
    %41 = vector.shape_cast %40 : vector<4x16x16xf32> to vector<4x256xf32>
    %c2_i32_26 = arith.constant 2 : i32
    %42 = arith.addi %1, %c2_i32_26 : i32
    %c0_27 = arith.constant 0 : index
    %c0_28 = arith.constant 0 : index
    %43 = arith.index_cast %42 : i32 to index
    %c2_29 = arith.constant 2 : index
    %44 = vector.load %arg2[%c0_27, %c0_28, %43, %c2_29] : memref<1x4x18x18xf32, #tpu.memory_space<vmem>>, vector<1x4x16x16xf32>
    %45 = vector.shape_cast %44 : vector<1x4x16x16xf32> to vector<4x16x16xf32>
    %46 = vector.shape_cast %45 : vector<4x16x16xf32> to vector<4x256xf32>
    %47 = tpu.concatenate %6, %11, %16, %21, %26, %31, %36, %41, %46 in 0 : vector<4x256xf32>, vector<4x256xf32>, vector<4x256xf32>, vector<4x256xf32>, vector<4x256xf32>, vector<4x256xf32>, vector<4x256xf32>, vector<4x256xf32>, vector<4x256xf32> -> vector<36x256xf32>
    %c0_30 = arith.constant 0 : index
    %c0_31 = arith.constant 0 : index
    %48 = vector.load %arg3[%c0_30, %c0_31] : memref<8x36xf32, #tpu.memory_space<vmem>>, vector<8x36xf32>
    %cst = arith.constant dense<0.000000e+00> : vector<8x256xf32>
    %49 = tpu.matmul %48, %47, %cst {dimension_numbers = #tpu.dot_dimension_numbers<[1], [0], [0], [1], [0, 0, 1, 1], [], []>} : vector<8x36xf32>, vector<36x256xf32>, vector<8x256xf32> -> vector<8x256xf32>
    %c0_32 = arith.constant 0 : index
    %c0_33 = arith.constant 0 : index
    %50 = vector.load %arg4[%c0_32, %c0_33] : memref<8x1xf32, #tpu.memory_space<vmem>>, vector<8x1xf32>
    %51 = vector.broadcast %50 : vector<8x1xf32> to vector<8x256xf32>
    %52 = arith.addf %49, %51 : vector<8x256xf32>
    %cst_34 = arith.constant 0.000000e+00 : f32
    %53 = vector.broadcast %cst_34 : f32 to vector<8x256xf32>
    %54 = arith.maximumf %52, %53 : vector<8x256xf32>
    %c0_35 = arith.constant 0 : index
    %c0_36 = arith.constant 0 : index
    %c0_37 = arith.constant 0 : index
    %55 = vector.load %arg5[%c0_35, %c0_36, %c0_37] : memref<1x8x256xf32, #tpu.memory_space<vmem>>, vector<1x8x256xf32>
    %56 = vector.shape_cast %55 : vector<1x8x256xf32> to vector<8x256xf32>
    %57 = vector.shape_cast %54 : vector<8x256xf32> to vector<1x8x256xf32>
    tpu.vector_store %arg5[%c0_35, %c0_36, %c0_37], %57 {strides = array<i32>} : memref<1x8x256xf32, #tpu.memory_space<vmem>>, vector<1x8x256xf32>,
    return
  }
  func.func @transform_0(%arg0: i32, %arg1: i32) -> (i32, i32, i32, i32) {
    %c0_i32 = arith.constant 0 : i32
    %c0_i32_0 = arith.constant 0 : i32
    %c0_i32_1 = arith.constant 0 : i32
    %c0_i32_2 = arith.constant 0 : i32
    return %arg0, %c0_i32, %c0_i32_0, %c0_i32_1 : i32, i32, i32, i32
  }
  func.func @transform_1(%arg0: i32, %arg1: i32) -> (i32, i32) {
    %c0_i32 = arith.constant 0 : i32
    %c0_i32_0 = arith.constant 0 : i32
    %c0_i32_1 = arith.constant 0 : i32
    return %c0_i32, %c0_i32_0 : i32, i32
  }
  func.func @transform_2(%arg0: i32, %arg1: i32) -> (i32, i32) {
    %c0_i32 = arith.constant 0 : i32
    %c0_i32_0 = arith.constant 0 : i32
    %c0_i32_1 = arith.constant 0 : i32
    return %c0_i32, %c0_i32_0 : i32, i32
  }
  func.func @transform_3(%arg0: i32, %arg1: i32) -> (i32, i32, i32) {
    %c0_i32 = arith.constant 0 : i32
    %c0_i32_0 = arith.constant 0 : i32
    return %arg0, %c0_i32, %arg1 : i32, i32, i32
  }
}

</mosaic_0001>

<bundles_post_ra>
// kernel: tpu_custom_call.1
= control target key start
LH: loop header
LB: loop body
LE: loop exit
PB: predicated region body
PF: predicated region fallthrough
CT: control target
= control target key end

     0   :  { %8 = vsyncpa [#allocation3], 0  ;;  %s4470_s0 = inlined_call_operand.vmem [shape: f32[2,4,18,18], index: 0, kind: input, shape index: {}]   ;;  %s4471_s1 = inlined_call_operand.vmem [shape: f32[8,36], index: 1, kind: input, shape index: {}]   ;;  %s4472_s2 = inlined_call_operand.vmem [shape: f32[8,1], index: 2, kind: input, shape index: {}]   ;;  %s4473_s3 = inlined_call_operand.hbm [shape: f32[2,8,256], index: 3, kind: output, shape index: {}]  }
   0x1   :  { %10 = vsyncpa [#allocation3 + $0x1], 0  ;;  %s2991_s12 = smov 0   ;;  %s2993_s13 = smov 0  }
   0x2   :  { %s2995_s14 = smov 0   ;;  %s2997_s15 = smov 0  }
   0x3   :  { %s2999_s16 = smov 0   ;;  %s3001_s17 = smov 0  }
   0x4 LB: > { %s2463_s18 = sadd.s32 4294967295, %s2955_s17   ;;  %s2464_s19 = sadd.s32 4294967294, %s2955_s17   ;;  %s2955_s17 = sphi %s3001_s17, %s16_s17   ;;  %s2951_s16 = sphi %s2999_s16, %s4555_s16   ;;  %s2947_s15 = sphi %s2997_s15, %s4554_s15   ;;  %s2943_s14 = sphi %s2995_s14, %s4553_s14   ;;  %s2939_s13 = sphi %s2993_s13, %s4552_s13   ;;  %s2935_s12 = sphi %s2991_s12, %s4551_s12  }
   0x5   : > { %s28_s20 = sadd.s32 1, %s2951_s16  ;;  %s105_s21 = sadd.s32 1, %s2943_s14 }
   0x6   : > { %p30_p0 = scmp.ge.s32.totalorder %s28_s20, 2  ;;  %p115_p1 = scmp.ne.s32.totalorder %s2943_s14, %s2939_s13 }
   0x7   : > { %p116_p2 = scmp.eq.s32.totalorder %s2463_s18, 1  ;;  %p121_p3 = scmp.ne.s32.totalorder %s2939_s13, %s2935_s12 }
   0x8   : > { %s4557_s20 = smov (%p30_p0, %s28_s20), 0  ;;  %p122_p5 = scmp.eq.s32.totalorder %s2464_s19, 1 }
   0x9   : > { %p3031_p4 = por %p116_p2, %p115_p1  ;;  %s100_s23 = ssub.s32 %s2951_s16, %s4557_s20 }
   0xa   : > { %p2467_p6 = scmp.ge.s32.totalorder %s2955_s17, 1  ;;  %p103_p7 = scmp.eq.s32.totalorder %s100_s23, 0 }
   0xb   : > { %p3038_p8 = por %p122_p5, %p121_p3  ;;  %p154_p9 = scmp.lt.s32.totalorder %s2955_s17, 3 }
   0xc   : > { %s3044_s25 = scalar_select %p103_p7, %s2943_s14, %s105_s21  }
   0xd   : > { %p155_p10 = pnand %p2467_p6, %p154_p9 }
   0xf   : > { %158 = sbr.rel (%p155_p10) target bundleno = 665 (0x299), region = 32 }
  0x16   : > { %p178_p11 = scmp.lt.s32.totalorder %s2947_s15, 1  ;;  %v2957_v0 = vmov 1983009808   ;;  %v199_v2 = vlaneseq  ;;  %s2958_s4 = smov 127   ;;  %v4482_v13 = vmov 0.0   ;;  %vm386_vm0 = vcmask 130048  }
  0x17   : > { %v197_v1 = vunpack.c.l.s4 %v2957_v0  ;;  %2357 = vmatprep.mubr.f32.mxu0 %v4482_v13  ;;  %s2960_s5 = smov 126   ;;  %s2962_s6 = smov 32   ;;  %vm388_vm1 = vcmask 261120   ;;  %vm390_vm2 = vcmask 392192   ;;  %vm392_vm3 = vcmask 523264  }
  0x18   : > { %s179_s26 = scalar_select %p178_p11, %s2947_s15, 1  ;;  %v3080_v15 = vshrl.u32 %v199_v2, 7  ;;  %vm394_vm4 = vcmask 654336   ;;  %vm396_vm5 = vcmask 785408   ;;  %vm398_vm6 = vcmask 916480  }
  0x19   : > { %v198_v14 = vunpack.c.0.s8 %v197_v1  ;;  %s2963_s7 = smov 64   ;;  %s2964_s8 = smov 16   ;;  %vm2267_vm7 = vcmask 1043456   ;;  %vm2283_vm8 = vcmask 293888  }
  0x1a   : > { %s2503_s27 = smul.u32 96, %s179_s26  ;;  %s2965_s9 = smov 48  }
  0x1b   : > { %v3118_v29 = vsub.s32 %v198_v14, %v3080_v15  ;;  %s2966_s10 = smov 96   ;;  %s2967_s11 = smov 80  }
  0x1c   : > { %s3051_s30 = scalar_lea.vmem %s4470_s0, %s2503_s27  ;;  %s2968_s18 = smov 112  }
  0x1d   : > { %v3054_v3 = vld [vmem:[%s3051_s30 + $0x38] sm:$0xff]  ;;  %v3057_v4 = vld [vmem:[%s3051_s30 + $0x8] sm:$0xff]  ;;  %v3068_v7 = vld [vmem:[%s3051_s30 + $0x50] sm:$0xff]  ;;  %s175_s27 = sand.u32 1, %s2939_s13   ;;  %s2494_s29 = sshll.u32 %s2947_s15, 8 }
  0x1e   : > { %425 = vrot.lane.b32.xlu1 %v3054_v3, %s2958_s4  ;;  %417 = vrot.lane.b32.xlu0 %v3057_v4, %s2958_s4  ;;  %v262_v5 = vcombine.low %v3057_v4, %v3054_v3  ;;  %v263_v6 = vcombine.high %v3057_v4, %v3054_v3  ;;  %v189_v8 = vld [vmem:[%s3051_s30 + $0x20] sm:$0xff]  ;;  %v3074_v11 = vld [vmem:[%s3051_s30 + $0x18] sm:$0xff]  ;;  %s2468_s28 = sshll.u32 %s175_s27, 4  ;;  %s2970_s15 = smov [#allocation2]  }
  0x1f   : > { %v278_v9 = vcombine.low %v189_v8, %v3068_v7  ;;  %v279_v10 = vcombine.high %v189_v8, %v3068_v7  ;;  %v3077_v12 = vld [vmem:[%s3051_s30 + $0x48] sm:$0xff]  ;;  %v3083_v16 = vld [vmem:[%s3051_s30] sm:$0xff]  ;;  %v3090_v19 = vld [vmem:[%s3051_s30 + $0x30] sm:$0xff] }
  0x20   : > { %v210_v17 = vcombine.low %v3074_v11, %v3077_v12  ;;  %v211_v18 = vcombine.high %v3074_v11, %v3077_v12  ;;  %v194_v20 = vcombine.low %v3083_v16, %v3090_v19  ;;  %v195_v21 = vcombine.high %v3083_v16, %v3090_v19  ;;  %v3097_v22 = vld [vmem:[%s3051_s30 + $0x21] sm:$0xff]  ;;  %v3100_v23 = vld [vmem:[%s3051_s30 + $0x51] sm:$0xff]  ;;  %v3106_v24 = vld [vmem:[%s3051_s30 + $0x9] sm:$0xff] }
  0x21   : > { %v969_v25 = vcombine.low %v3097_v22, %v3100_v23  ;;  %v3111_v26 = vld [vmem:[%s3051_s30 + $0x39] sm:$0xff]  ;;  %v970_v27 = vcombine.high %v3097_v22, %v3100_v23  ;;  %v3123_v31 = vrot.slane %v262_v5, %v3118_v29  ;;  %v3126_v32 = vrot.slane %v278_v9, %v3118_v29  ;;  %v3136_v34 = vld [vmem:[%s3051_s30 + $0x49] sm:$0xff]  ;;  %v3145_v37 = vld [vmem:[%s3051_s30 + $0x1] sm:$0xff] }
  0x22   : > { %429 = vrot.lane.b32.xlu1 %v3068_v7, %s2958_s4  ;;  %421 = vrot.lane.b32.xlu0 %v189_v8, %s2958_s4  ;;  %v953_v28 = vcombine.low %v3106_v24, %v3111_v26  ;;  %v954_v30 = vcombine.high %v3106_v24, %v3111_v26  ;;  %v3133_v33 = vld [vmem:[%s3051_s30 + $0x19] sm:$0xff]  ;;  %v3152_v40 = vld [vmem:[%s3051_s30 + $0x31] sm:$0xff]  ;;  %v3165_v45 = vrot.slane %v263_v6, %v3118_v29 }
  0x23   : > { %v3139_v35 = vrot.slane %v969_v25, %v3118_v29  ;;  %v901_v38 = vcombine.low %v3133_v33, %v3136_v34  ;;  %v902_v39 = vcombine.high %v3133_v33, %v3136_v34  ;;  %v3155_v41 = vrot.slane %v970_v27, %v3118_v29  ;;  %v3264_v9 = vld [vmem:[%s3051_s30 + $0x52] sm:$0xff]  ;;  %v3292_v14 = vld [vmem:[%s3051_s30 + $0x4a] sm:$0xff] }
  0x24   : > { %v3142_v36 = vrot.slane %v953_v28, %v3118_v29  ;;  %v3158_v42 = vrot.slane %v954_v30, %v3118_v29  ;;  %v885_v43 = vcombine.low %v3145_v37, %v3152_v40  ;;  %v886_v44 = vcombine.high %v3145_v37, %v3152_v40  ;;  %4501 = vst [vmem:[#allocation7_spill] sm:$0xff] %v3292_v14 }
  0x25   : > { %v3168_v46 = vrot.slane %v279_v10, %v3118_v29  ;;  %v3171_v47 = vrot.slane %v901_v38, %v3118_v29  ;;  %v3174_v48 = vrot.slane %v902_v39, %v3118_v29  ;;  %v295_v53 = vcombine.high %v3123_v31, %v3126_v32  ;;  %v3267_v10 = vld [vmem:[%s3051_s30 + $0x3a] sm:$0xff] }
  0x26   : > { %419 = vrot.lane.b32.xlu1 %v3074_v11, %s2958_s4  ;;  %415 = vrot.lane.b32.xlu0 %v3083_v16, %s2958_s4  ;;  %v3181_v49 = vrot.slane %v885_v43, %v3118_v29  ;;  %v3184_v50 = vrot.slane %v886_v44, %v3118_v29  ;;  %v986_v51 = vcombine.high %v3142_v36, %v3139_v35 }
  0x27   : > { %4499 = vst [vmem:[#allocation5_spill] sm:$0xff] %v3168_v46  ;;  %v1001_v54 = vcombine.low %v3158_v42, %v3155_v41  ;;  %v294_v56 = vcombine.low %v3123_v31, %v3126_v32  ;;  %v3203_v59 = vrot.slane %v210_v17, %v3118_v29  ;;  %v3206_v60 = vrot.slane %v194_v20, %v3118_v29 }
  0x28   : > { %v918_v52 = vcombine.high %v3181_v49, %v3171_v47  ;;  %v917_v55 = vcombine.low %v3181_v49, %v3171_v47  ;;  %v3212_v61 = vrot.slane %v211_v18, %v3118_v29  ;;  %v3215_v62 = vrot.slane %v195_v21, %v3118_v29 }
  0x29   : > { %v227_v1 = vcombine.high %v3206_v60, %v3203_v59  ;;  %v2961_v17 = vmov 1934713408  }
  0x2a   : > { %427 = vrot.lane.b32.xlu1 %v3077_v12, %s2958_s4  ;;  %423 = vrot.lane.b32.xlu0 %v3090_v19, %s2958_s4  ;;  %v229_v18 = vunpack.c.l.s4 %v2961_v17 }
  0x2c   : > { %v230_v21 = vunpack.c.0.s8 %v229_v18 }
  0x2e   : > { %651 = vrot.lane.b32.xlu1 %v189_v8, %s2960_s5  ;;  %647 = vrot.lane.b32.xlu0 %v3057_v4, %s2960_s5  ;;  %v3257_v8 = vld [vmem:[%s3051_s30 + $0xa] sm:$0xff] }
  0x32   : > { %659 = vrot.lane.b32.xlu1 %v3068_v7, %s2960_s5  ;;  %655 = vrot.lane.b32.xlu0 %v3054_v3, %s2960_s5  ;;  %v3254_v7 = vld [vmem:[%s3051_s30 + $0x22] sm:$0xff] }
  0x36   : > { %649 = vrot.lane.b32.xlu1 %v3074_v11, %s2960_s5  ;;  %645 = vrot.lane.b32.xlu0 %v3083_v16, %s2960_s5  ;;  %v3282_v11 = vld [vmem:[%s3051_s30 + $0x1a] sm:$0xff]  ;;  %v3295_v16 = vld [vmem:[%s3051_s30 + $0x32] sm:$0xff] }
  0x37   : > { %4500 = vst [vmem:[#allocation6_spill] sm:$0xff] %v3282_v11 }
  0x3a   : > { %657 = vrot.lane.b32.xlu1 %v3077_v12, %s2960_s5  ;;  %653 = vrot.lane.b32.xlu0 %v3090_v19, %s2960_s5  ;;  %v3285_v12 = vld [vmem:[%s3051_s30 + $0x2] sm:$0xff]  ;;  %s177_s30 = scalar_lea.vmem [#allocation2], %s2468_s28 }
  0x3e   : > { %1335 = vrot.lane.b32.xlu1 %v3097_v22, %s2960_s5  ;;  %1331 = vrot.lane.b32.xlu0 %v3106_v24, %s2960_s5 }
  0x42   : > { %1343 = vrot.lane.b32.xlu1 %v3100_v23, %s2960_s5  ;;  %1339 = vrot.lane.b32.xlu0 %v3111_v26, %s2960_s5 }
  0x46   : > { %1789 = vrot.lane.b32.xlu1 %v3254_v7, %s2958_s4  ;;  %1785 = vrot.lane.b32.xlu0 %v3257_v8, %s2958_s4 }
  0x4a   : > { %1797 = vrot.lane.b32.xlu1 %v3264_v9, %s2958_s4  ;;  %1793 = vrot.lane.b32.xlu0 %v3267_v10, %s2958_s4 }
  0x4e   : > { %1333 = vrot.lane.b32.xlu1 %v3133_v33, %s2960_s5  ;;  %1329 = vrot.lane.b32.xlu0 %v3145_v37, %s2960_s5 }
  0x52   : > { %1341 = vrot.lane.b32.xlu1 %v3136_v34, %s2960_s5  ;;  %1337 = vrot.lane.b32.xlu0 %v3152_v40, %s2960_s5 }
  0x56   : > { %1787 = vrot.lane.b32.xlu1 %v3282_v11, %s2958_s4  ;;  %1783 = vrot.lane.b32.xlu0 %v3285_v12, %s2958_s4 }
  0x5a   : > { %1795 = vrot.lane.b32.xlu1 %v3292_v14, %s2958_s4  ;;  %1791 = vrot.lane.b32.xlu0 %v3295_v16, %s2958_s4 }
  0x5e   : > { %1105 = vrot.lane.b32.xlu1 %v3097_v22, %s2958_s4  ;;  %1101 = vrot.lane.b32.xlu0 %v3106_v24, %s2958_s4 }
  0x62   : > { %1113 = vrot.lane.b32.xlu1 %v3100_v23, %s2958_s4  ;;  %1109 = vrot.lane.b32.xlu0 %v3111_v26, %s2958_s4  ;;  %v3334_v26 = vsub.s32 %v230_v21, %v3080_v15 }
  0x64   : > { %v3362_v3 = vrot.slane %v918_v52, %v3334_v26 }
  0x66   : > { %1103 = vrot.lane.b32.xlu1 %v3133_v33, %s2958_s4  ;;  %1099 = vrot.lane.b32.xlu0 %v3145_v37, %s2958_s4  ;;  %v3348_v37 = vrot.slane %v986_v51, %v3334_v26 }
  0x6a   : > { %1111 = vrot.lane.b32.xlu1 %v3136_v34, %s2958_s4  ;;  %1107 = vrot.lane.b32.xlu0 %v3152_v40, %s2958_s4  ;;  %s2385_s4 = sshll.u32 %s177_s30, 4  ;;  %s4425_s4 = int_to_ptr.vmem [resolvable:$true] %s2385_s4 }
  0x6e   : > { %2015 = vrot.lane.b32.xlu0 %v3257_v8, %s2960_s5  ;;  %2019 = vrot.lane.b32.xlu1 %v3254_v7, %s2960_s5 }
  0x72   : > { %2023 = vrot.lane.b32.xlu0 %v3267_v10, %s2960_s5  ;;  %2027 = vrot.lane.b32.xlu1 %v3264_v9, %s2960_s5 }
  0x76   : > { %2013 = vrot.lane.b32.xlu0 %v3285_v12, %s2960_s5  ;;  %2017 = vrot.lane.b32.xlu1 %v3282_v11, %s2960_s5 }
  0x7a   : > { %2021 = vrot.lane.b32.xlu0 %v3295_v16, %s2960_s5  ;;  %2025 = vrot.lane.b32.xlu1 %v3292_v14, %s2960_s5 }
  0x90   : > { %v426_v19 = vpop.permute.xlu1 %425  ;;  %v418_v20 = vpop.permute.xlu0 %417 }
  0x91   : > { %v507_v22 = vcombine.low %v418_v20, %v426_v19 }
  0x93   : > { %v3337_v27 = vrot.slane %v507_v22, %v3118_v29 }
  0x94   : > { %v430_v23 = vpop.permute.xlu1 %429  ;;  %v422_v24 = vpop.permute.xlu0 %421 }
  0x95   : > { %v523_v25 = vcombine.low %v422_v24, %v430_v23  ;;  %v524_v21 = vcombine.high %v422_v24, %v430_v23 }
  0x97   : > { %v3340_v28 = vrot.slane %v523_v25, %v3118_v29 }
  0x98   : > { %v420_v30 = vpop.permute.xlu1 %419  ;;  %v416_v33 = vpop.permute.xlu0 %415 }
  0x99   : > { %v540_v34 = vcombine.high %v3337_v27, %v3340_v28 }
  0x9b   : > { %v3351_v15 = vrot.slane %v540_v34, %v3334_v26  ;;  %v508_v34 = vcombine.high %v418_v20, %v426_v19 }
  0x9c   : > { %v428_v38 = vpop.permute.xlu1 %427  ;;  %v424_v39 = vpop.permute.xlu0 %423 }
  0x9d   : > { %v455_v40 = vcombine.low %v420_v30, %v428_v38  ;;  %v439_v43 = vcombine.low %v416_v33, %v424_v39  ;;  %v2572_v44 = vpack.i.bf16 %v3348_v37, %v3351_v15  ;;  %v3371_v2 = vrot.slane %v508_v34, %v3118_v29 }
  0x9e   : > { %v456_v6 = vcombine.high %v420_v30, %v428_v38  ;;  %v440_v34 = vcombine.high %v416_v33, %v424_v39  ;;  %v3405_v33 = vrot.slane %v1001_v54, %v3334_v26 }
  0x9f   : > { %v463_v17 = vrot.slane %v455_v40, %v3118_v29  ;;  %v447_v18 = vrot.slane %v439_v43, %v3118_v29  ;;  %2573 = vrot.lane.b32.xlu0 %v2572_v44, %s2962_s6  ;;  %v3368_v40 = vrot.slane %v524_v21, %v3118_v29 }
  0xa0   : > { %v652_v51 = vpop.permute.xlu1 %651  ;;  %v648_v22 = vpop.permute.xlu0 %647  ;;  %v3392_v58 = vrot.slane %v456_v6, %v3118_v29 }
  0xa1   : > { %v472_v25 = vcombine.high %v447_v18, %v463_v17  ;;  %v471_v63 = vcombine.low %v447_v18, %v463_v17  ;;  %v3418_v18 = vrot.slane %v440_v34, %v3118_v29 }
  0xa3   : > { %v3365_v4 = vrot.slane %v472_v25, %v3334_v26  ;;  %v555_v25 = vcombine.low %v3371_v2, %v3368_v40  ;;  %v3422_v57 = vrot.slane %v471_v63, %v3334_v26  ;;  %v3441_v63 = vrot.slane %v294_v56, %v3334_v26 }
  0xa4   : > { %v660_v23 = vpop.permute.xlu1 %659  ;;  %v656_v24 = vpop.permute.xlu0 %655  ;;  %v487_v31 = vcombine.low %v3418_v18, %v3392_v58 }
  0xa5   : > { %v753_v43 = vcombine.low %v652_v51, %v660_v23  ;;  %v737_v44 = vcombine.low %v648_v22, %v656_v24  ;;  %v2577_v19 = vpack.i.bf16 %v3362_v3, %v3365_v4  ;;  %v738_v6 = vcombine.high %v648_v22, %v656_v24  ;;  %4503 = vst [vmem:[#allocation9_spill] sm:$0xff] %v3422_v57 }
  0xa6   : > { %4504 = vst [vmem:[#allocation10_spill] sm:$0xff] %v3441_v63  ;;  %v503_v56 = vcombine.high %v3422_v57, %v4482_v13 }
  0xa7   : > { %v761_v20 = vrot.slane %v753_v43, %v3118_v29  ;;  %v745_v52 = vrot.slane %v737_v44, %v3118_v29  ;;  %2578 = vrot.lane.b32.xlu0 %v2577_v19, %s2962_s6  ;;  %v309_v43 = vrot.slane %v295_v53, %v3334_v26  ;;  %v3399_v19 = vrot.slane %v555_v25, %v3334_v26 }
  0xa8   : > { %v3380_v21 = vpop.permute.xlu1 %649  ;;  %v3382_v5 = vpop.permute.xlu0 %645  ;;  %v3411_v53 = vrot.slane %v917_v55, %v3334_v26  ;;  %v3447_v24 = vrot.slane %v738_v6, %v3118_v29 }
  0xa9   : > { %v770_v0 = vcombine.high %v745_v52, %v761_v20  ;;  %v769_v25 = vcombine.low %v745_v52, %v761_v20  ;;  %v3455_v52 = vrot.slane %v227_v1, %v3334_v26  ;;  %v2587_v32 = vpack.i.bf16 %v3405_v33, %v3399_v19 }
  0xaa   : > { %4502 = vst [vmem:[#allocation8_spill] sm:$0xff] %v3411_v53  ;;  %v949_v22 = vcombine.high %v3411_v53, %v4482_v13  ;;  %4506 = vst [vmem:[#allocation12_spill] sm:$0xff] %v3447_v24  ;;  %v3489_v53 = vrot.slane %v487_v31, %v3334_v26  ;;  %v539_v31 = vcombine.low %v3337_v27, %v3340_v28 }
  0xab   : > { %v3389_v44 = vrot.slane %v770_v0, %v3334_v26  ;;  %v754_v0 = vcombine.high %v652_v51, %v660_v23  ;;  %v3464_v34 = vrot.slane %v769_v25, %v3334_v26  ;;  %v4508_v25 = vcombine.low %v3184_v50, %v3174_v48 }
  0xac   : > { %v3394_v30 = vpop.permute.xlu1 %657  ;;  %v3396_v38 = vpop.permute.xlu0 %653  ;;  %v4510_v28 = vcombine.high %v3158_v42, %v3155_v41 }
  0xad   : > { %v685_v39 = vcombine.low %v3380_v21, %v3394_v30  ;;  %v669_v17 = vcombine.low %v3382_v5, %v3396_v38  ;;  %v2582_v54 = vpack.i.bf16 %v3389_v44, %v309_v43  ;;  %v3444_v23 = vrot.slane %v754_v0, %v3118_v29  ;;  %4507 = vst [vmem:[#allocation13_spill] sm:$0xff] %v3464_v34 }
  0xae   : > { %v801_v57 = vcombine.high %v3464_v34, %v4482_v13 }
  0xaf   : > { %v3425_v47 = vrot.slane %v685_v39, %v3118_v29  ;;  %v3428_v49 = vrot.slane %v669_v17, %v3118_v29  ;;  %2583 = vrot.lane.b32.xlu1 %v2582_v54, %s2962_s6  ;;  %4505 = vst [vmem:[#allocation11_spill] sm:$0xff] %v3444_v23  ;;  %v785_v39 = vcombine.low %v3447_v24, %v3444_v23 }
  0xb0   : > { %v3431_v55 = vpop.permute.xlu1 %1335  ;;  %v3433_v51 = vpop.permute.xlu0 %1331  ;;  %v326_v17 = vcombine.high %v3441_v63, %v4482_v13  ;;  %v3482_v54 = vrot.slane %v4508_v25, %v3334_v26 }
  0xb1   : > { %v702_v20 = vcombine.high %v3428_v49, %v3425_v47  ;;  %v3512_v34 = vrot.slane %v785_v39, %v3334_v26  ;;  %v701_v41 = vcombine.low %v3428_v49, %v3425_v47 }
  0xb2   : > { %v2622_v23 = vpack.i.bf16 %v801_v57, %v326_v17  ;;  %v4511_v57 = vcombine.low %v3142_v36, %v3139_v35  ;;  %v802_v36 = vcombine.high %v3389_v44, %v4482_v13 }
  0xb3   : > { %v3467_v0 = vrot.slane %v702_v20, %v3334_v26  ;;  %2588 = vrot.lane.b32.xlu1 %v2587_v32, %s2963_s7  ;;  %v2617_v20 = vpack.i.bf16 %v949_v22, %v503_v56  ;;  %v1018_v22 = vcombine.high %v3348_v37, %v4482_v13  ;;  %v4509_v56 = vcombine.low %v3165_v45, %v3168_v46 }
  0xb4   : > { %v3470_v1 = vpop.permute.xlu1 %1343  ;;  %v3472_v6 = vpop.permute.xlu0 %1339  ;;  %v2597_v37 = vpack.i.bf16 %v3482_v54, %v3489_v53  ;;  %v3584_v46 = vrot.slane %v701_v41, %v3334_v26 }
  0xb5   : > { %v2592_v32 = vpack.i.bf16 %v3467_v0, %v3455_v52  ;;  %v3503_v25 = vrot.slane %v4509_v56, %v3334_v26 }
  0xb6   : > { %4516 = vst [vmem:[#allocation17_spill] sm:$0xff] %v3584_v46 }
  0xb7   : > { %2618 = vrot.lane.b32.xlu1 %v2617_v20, %s2964_s8  ;;  %2593 = vrot.lane.b32.xlu0 %v2592_v32, %s2962_s6  ;;  %v556_v20 = vcombine.high %v3371_v2, %v3368_v40  ;;  %v572_v32 = vcombine.high %v3351_v15, %v4482_v13  ;;  %v327_v2 = vcombine.high %v309_v43, %v4482_v13 }
  0xb8   : > { %v3493_v63 = vpop.permute.xlu1 %1789  ;;  %v3495_v24 = vpop.permute.xlu0 %1785  ;;  %v3527_v15 = vrot.slane %v4510_v28, %v3334_v26  ;;  %v3533_v40 = vrot.slane %v4511_v57, %v3334_v26  ;;  %v2602_v39 = vpack.i.bf16 %v3512_v34, %v3503_v25  ;;  %v3541_v43 = vrot.slane %v539_v31, %v3334_v26 }
  0xb9   : > { %v3538_v17 = vrot.slane %v556_v20, %v3334_v26  ;;  %v1437_v20 = vcombine.low %v3431_v55, %v3470_v1  ;;  %v1421_v31 = vcombine.low %v3433_v51, %v3472_v6  ;;  %v4514_v28 = vcombine.low %v3206_v60, %v3203_v59 }
  0xba   : > { %4512 = vst [vmem:[#allocation14_spill] sm:$0xff] %v3533_v40  ;;  %4513 = vst [vmem:[#allocation15_spill] sm:$0xff] %v3541_v43  ;;  %v1017_v44 = vcombine.high %v3533_v40, %v4482_v13  ;;  %v2642_v40 = vpack.i.bf16 %v802_v36, %v327_v2 }
  0xbb   : > { %2623 = vrot.lane.b32.xlu1 %v2622_v23, %s2964_s8  ;;  %2598 = vrot.lane.b32.xlu0 %v2597_v37, %s2963_s7  ;;  %v2627_v23 = vpack.i.bf16 %v1018_v22, %v572_v32  ;;  %v1019_v22 = vcombine.high %v3405_v33, %v4482_v13  ;;  %v2607_v33 = vpack.i.bf16 %v3527_v15, %v3538_v17 }
  0xbc   : > { %v3518_v56 = vpop.permute.xlu1 %1797  ;;  %v3520_v27 = vpop.permute.xlu0 %1793  ;;  %v573_v32 = vcombine.high %v3399_v19, %v4482_v13  ;;  %v571_v37 = vcombine.high %v3541_v43, %v4482_v13  ;;  %v3575_v57 = vrot.slane %v4514_v28, %v3334_v26  ;;  %v3587_v19 = vrot.slane %v1437_v20, %v3118_v29 }
  0xbd   : > { %v1891_v42 = vcombine.low %v3493_v63, %v3518_v56  ;;  %v1875_v35 = vcombine.low %v3495_v24, %v3520_v27  ;;  %v3590_v13 = vrot.slane %v1421_v31, %v3118_v29 }
  0xbe   : > { %4515 = vst [vmem:[#allocation16_spill] sm:$0xff] %v3575_v57  ;;  %v2647_v41 = vpack.i.bf16 %v1019_v22, %v573_v32 }
  0xbf   : > { %2628 = vrot.lane.b32.xlu1 %v2627_v23, %s2965_s9  ;;  %2603 = vrot.lane.b32.xlu0 %v2602_v39, %s2963_s7  ;;  %v3578_v23 = vrot.slane %v1891_v42, %v3118_v29  ;;  %v3581_v39 = vrot.slane %v1875_v35, %v3118_v29  ;;  %v4517_v42 = vmov 0.0   ;;  %v2612_v35 = vpack.i.bf16 %v1017_v44, %v571_v37 }
  0xc0   : > { %v3559_v47 = vpop.permute.xlu1 %1333  ;;  %v3561_v49 = vpop.permute.xlu0 %1329  ;;  %v259_v2 = vcombine.high %v3455_v52, %v4517_v42  ;;  %v734_v36 = vcombine.high %v3467_v0, %v4517_v42  ;;  %v258_v20 = vcombine.high %v3575_v57, %v4517_v42  ;;  %v733_v52 = vcombine.high %v3584_v46, %v4517_v42 }
  0xc1   : > { %v1453_v22 = vcombine.low %v3590_v13, %v3587_v19  ;;  %v951_v32 = vcombine.high %v3482_v54, %v4517_v42  ;;  %v505_v28 = vcombine.high %v3489_v53, %v4517_v42  ;;  %v504_v57 = vcombine.high %v3365_v4, %v4517_v42 }
  0xc2   : > { %v2662_v37 = vpack.i.bf16 %v734_v36, %v259_v2  ;;  %v950_v46 = vcombine.high %v3362_v3, %v4517_v42  ;;  %v2632_v54 = vpack.i.bf16 %v733_v52, %v258_v20  ;;  %v686_v2 = vcombine.high %v3380_v21, %v3394_v30 }
  0xc3   : > { %2643 = vrot.lane.b32.xlu1 %v2642_v40, %s2965_s9  ;;  %2608 = vrot.lane.b32.xlu0 %v2607_v33, %s2966_s10  ;;  %v1907_v40 = vcombine.low %v3581_v39, %v3578_v23  ;;  %v670_v53 = vcombine.high %v3382_v5, %v3396_v38  ;;  %v3648_v36 = vrot.slane %v1453_v22, %v3334_v26 }
  0xc4   : > { %v3594_v59 = vpop.permute.xlu1 %1341  ;;  %v3596_v60 = vpop.permute.xlu0 %1337  ;;  %v1653_v20 = vcombine.low %v3254_v7, %v3264_v9  ;;  %v2667_v30 = vpack.i.bf16 %v951_v32, %v505_v28  ;;  %v1908_v38 = vcombine.high %v3581_v39, %v3578_v23  ;;  %v1637_v52 = vcombine.low %v3257_v8, %v3267_v10 }
  0xc5   : > { %v1369_v31 = vcombine.low %v3559_v47, %v3594_v59  ;;  %v1353_v33 = vcombine.low %v3561_v49, %v3596_v60  ;;  %4519 = vst [vmem:[#allocation19_spill] sm:$0xff] %v3648_v36  ;;  %v3665_v22 = vrot.slane %v686_v2, %v3118_v29  ;;  %v3670_v28 = vrot.slane %v670_v53, %v3118_v29 }
  0xc6   : > { %v1454_v23 = vcombine.high %v3590_v13, %v3587_v19  ;;  %v1485_v39 = vcombine.high %v3648_v36, %v4517_v42  ;;  %v3689_v13 = vrot.slane %v1653_v20, %v3118_v29  ;;  %v3692_v19 = vrot.slane %v1637_v52, %v3118_v29 }
  0xc7   : > { %2648 = vrot.lane.b32.xlu1 %v2647_v41, %s2967_s11  ;;  %2613 = vrot.lane.b32.xlu0 %v2612_v35, %s2964_s8  ;;  %v3629_v41 = vrot.slane %v1907_v40, %v3334_v26  ;;  %v3632_v35 = vrot.slane %v1369_v31, %v3118_v29  ;;  %v3635_v43 = vrot.slane %v1353_v33, %v3118_v29 }
  0xc8   : > { %v3616_v0 = vpop.permute.xlu1 %1787  ;;  %v3618_v44 = vpop.permute.xlu0 %1783  ;;  %v2637_v31 = vpack.i.bf16 %v950_v46, %v504_v57  ;;  %v328_v52 = vcombine.high %v3503_v25, %v4517_v42  ;;  %v488_v36 = vcombine.high %v3418_v18, %v3392_v58  ;;  %v4525_v58 = vcombine.low %v3215_v62, %v3212_v61 }
  0xc9   : > { %4518 = vst [vmem:[#allocation18_spill] sm:$0xff] %v3629_v41  ;;  %v1385_v40 = vcombine.low %v3635_v43, %v3632_v35  ;;  %v1939_v33 = vcombine.high %v3629_v41, %v4517_v42 }
  0xca   : > { %v250_v18 = vrot.slane %v4525_v58, %v3334_v26  ;;  %v1569_v58 = vcombine.low %v3285_v12, %v3295_v16 }
  0xcb   : > { %2663 = vrot.lane.b32.xlu1 %v2662_v37, %s2965_s9  ;;  %2633 = vrot.lane.b32.xlu0 %v2632_v54, %s2964_s8  ;;  %v3683_v2 = vrot.slane %v1385_v40, %v3334_v26  ;;  %v2652_v53 = vpack.i.bf16 %v1939_v33, %v1485_v39 }
  0xcc   : > { %v3643_v4 = vpop.permute.xlu1 %1795  ;;  %v3645_v3 = vpop.permute.xlu0 %1791 }
  0xcd   : > { %v1823_v21 = vcombine.low %v3616_v0, %v3643_v4  ;;  %v1807_v5 = vcombine.low %v3618_v44, %v3645_v3  ;;  %4522 = vst [vmem:[#allocation22_spill] sm:$0xff] %v3683_v2 }
  0xcf   : > { %v1831_v37 = vrot.slane %v1823_v21, %v3118_v29  ;;  %v1815_v32 = vrot.slane %v1807_v5, %v3118_v29  ;;  %2668 = vrot.lane.b32.xlu1 %v2667_v30, %s2967_s11  ;;  %2638 = vrot.lane.b32.xlu0 %v2637_v31, %s2965_s9  ;;  %v3686_v21 = vrot.slane %v1908_v38, %v3334_v26 }
  0xd0   : > { %v3676_v46 = vpop.permute.xlu1 %1105  ;;  %v3678_v57 = vpop.permute.xlu0 %1101  ;;  %v717_v30 = vcombine.low %v3670_v28, %v3665_v22  ;;  %v3705_v38 = vrot.slane %v1454_v23, %v3334_v26  ;;  %v803_v23 = vcombine.high %v3512_v34, %v4517_v42 }
  0xd1   : > { %4520 = vst [vmem:[#allocation20_spill] sm:$0xff] %v3676_v46  ;;  %4521 = vst [vmem:[#allocation21_spill] sm:$0xff] %v3678_v57  ;;  %v1839_v54 = vcombine.low %v1815_v32, %v1831_v37 }
  0xd2   : > { %v2657_v39 = vpack.i.bf16 %v3686_v21, %v3705_v38  ;;  %v725_v34 = vrot.slane %v717_v30, %v3334_v26  ;;  %v502_v30 = vrot.slane %v488_v36, %v3334_v26 }
  0xd3   : > { %v3695_v5 = vrot.slane %v1839_v54, %v3334_v26  ;;  %2653 = vrot.lane.b32.xlu0 %v2652_v53, %s2964_s8  ;;  %v1417_v54 = vcombine.high %v3683_v2, %v4517_v42 }
  0xd4   : > { %v3700_v40 = vpop.permute.xlu1 %1113  ;;  %v3702_v31 = vpop.permute.xlu0 %1109 }
  0xd5   : > { %4523 = vst [vmem:[#allocation23_spill] sm:$0xff] %v3695_v5  ;;  %4524 = vst [vmem:[#allocation24_spill] sm:$0xff] %v3702_v31  ;;  %v1207_v20 = vcombine.low %v3676_v46, %v3700_v40  ;;  %v1191_v33 = vcombine.low %v3678_v57, %v3702_v31  ;;  %v1871_v53 = vcombine.high %v3695_v5, %v4517_v42 }
  0xd6   : > { %v1669_v57 = vcombine.low %v3692_v19, %v3689_v13  ;;  %v1840_v46 = vcombine.high %v1815_v32, %v1831_v37  ;;  %v1386_v32 = vcombine.high %v3635_v43, %v3632_v35 }
  0xd7   : > { %v3724_v41 = vrot.slane %v1207_v20, %v3118_v29  ;;  %v3727_v25 = vrot.slane %v1191_v33, %v3118_v29  ;;  %2658 = vrot.lane.b32.xlu0 %v2657_v39, %s2962_s6  ;;  %v2672_v2 = vpack.i.bf16 %v1871_v53, %v1417_v54  ;;  %v1585_v20 = vcombine.low %v3282_v11, %v3292_v14 }
  0xd8   : > { %v3732_v31 = vpop.permute.xlu1 %1103  ;;  %v3734_v5 = vpop.permute.xlu0 %1099  ;;  %v2682_v39 = vpack.i.bf16 %v803_v23, %v328_v52  ;;  %v574_v54 = vcombine.high %v3538_v17, %v4517_v42  ;;  %v1020_v53 = vcombine.high %v3527_v15, %v4517_v42  ;;  %v4526_v11 = vcombine.high %v3184_v50, %v3174_v48 }
  0xd9   : > { %v1223_v33 = vcombine.low %v3727_v25, %v3724_v41  ;;  %2673 = vrot.lane.b32.xlu1 %v2672_v2, %s2964_s8  ;;  %v3758_v37 = vrot.slane %v1669_v57, %v3334_v26  ;;  %v2677_v15 = vpack.i.bf16 %v725_v34, %v250_v18  ;;  %v1854_v43 = vrot.slane %v1840_v46, %v3334_v26 }
  0xda   : > { %v948_v14 = vrot.slane %v4526_v11, %v3334_v26  ;;  %v2692_v11 = vpack.i.bf16 %v1020_v53, %v574_v54  ;;  %v3777_v35 = vrot.slane %v1585_v20, %v3118_v29  ;;  %v3780_v57 = vrot.slane %v1569_v58, %v3118_v29 }
  0xdb   : > { %v3763_v17 = vrot.slane %v1223_v33, %v3334_v26  ;;  %2683 = vrot.lane.b32.xlu0 %v2682_v39, %s2967_s11  ;;  %v1701_v23 = vcombine.high %v3758_v37, %v4517_v42  ;;  %v1400_v46 = vrot.slane %v1386_v32, %v3334_v26  ;;  %v260_v54 = vcombine.high %v250_v18, %v4517_v42 }
  0xdc   : > { %v3766_v2 = vpop.permute.xlu1 %1111  ;;  %v3768_v36 = vpop.permute.xlu0 %1107  ;;  %v2687_v52 = vpack.i.bf16 %v948_v14, %v502_v30  ;;  %v735_v53 = vcombine.high %v725_v34, %v4517_v42  ;;  %v1892_v58 = vcombine.high %v3493_v63, %v3518_v56  ;;  %v1422_v32 = vcombine.high %v3433_v51, %v3472_v6  ;;  %v4529_v34 = vld [vmem:[#allocation12_spill] sm:$0xff] }
  0xdd   : > { %4527 = vst [vmem:[#allocation25_spill] sm:$0xff] %v3763_v17  ;;  %v1139_v48 = vcombine.low %v3732_v31, %v3766_v2  ;;  %v1123_v50 = vcombine.low %v3734_v5, %v3768_v36  ;;  %2678 = vrot.lane.b32.xlu1 %v2677_v15, %s2963_s7  ;;  %v1255_v20 = vcombine.high %v3763_v17, %v4517_v42 }
  0xde   : > { %v1876_v15 = vcombine.high %v3495_v24, %v3520_v27  ;;  %v1601_v18 = vcombine.low %v3780_v57, %v3777_v35  ;;  %v1940_v56 = vcombine.high %v3686_v21, %v4517_v42  ;;  %v2712_v27 = vpack.i.bf16 %v735_v53, %v260_v54 }
  0xdf   : > { %2693 = vrot.lane.b32.xlu0 %v2692_v11, %s2968_s18  ;;  %v3786_v33 = vrot.slane %v1139_v48, %v3118_v29  ;;  %v3789_v39 = vrot.slane %v1123_v50, %v3118_v29  ;;  %v2702_v48 = vpack.i.bf16 %v1854_v43, %v1400_v46  ;;  %v1438_v50 = vcombine.high %v3431_v55, %v3470_v1  ;;  %v4528_v11 = vld [vmem:[#allocation11_spill] sm:$0xff] }
  0xe0   : > { %v786_v17 = vcombine.high %v4529_v34, %v4528_v11  ;;  %v2697_v24 = vpack.i.bf16 %v1701_v23, %v1255_v20  ;;  %v506_v55 = vcombine.high %v502_v30, %v4517_v42  ;;  %v952_v51 = vcombine.high %v948_v14, %v4517_v42 }
  0xe1   : > { %2688 = vrot.lane.b32.xlu1 %v2687_v52, %s2966_s10  ;;  %v1155_v63 = vcombine.low %v3789_v39, %v3786_v33  ;;  %v1670_v1 = vcombine.high %v3692_v19, %v3689_v13  ;;  %v3819_v6 = vrot.slane %v1892_v58, %v3118_v29  ;;  %v3822_v52 = vrot.slane %v1876_v15, %v3118_v29  ;;  %v4530_v13 = vld [vmem:[#allocation5_spill] sm:$0xff] }
  0xe2   : > { %v1224_v23 = vcombine.high %v3727_v25, %v3724_v41  ;;  %v1486_v21 = vcombine.high %v3705_v38, %v4517_v42  ;;  %v3830_v30 = vrot.slane %v1438_v50, %v3118_v29  ;;  %v3833_v14 = vrot.slane %v1422_v32, %v3118_v29 }
  0xe3   : > { %2703 = vrot.lane.b32.xlu0 %v2702_v48, %s2962_s6  ;;  %v4531_v19 = vcombine.high %v3165_v45, %v4530_v13  ;;  %v3840_v54 = vrot.slane %v1155_v63, %v3334_v26  ;;  %v800_v25 = vrot.slane %v786_v17, %v3334_v26  ;;  %v3845_v38 = vrot.slane %v1601_v18, %v3334_v26 }
  0xe4   : > { %v2707_v41 = vpack.i.bf16 %v1940_v56, %v1486_v21  ;;  %v1923_v53 = vcombine.low %v3822_v52, %v3819_v6  ;;  %v2722_v58 = vpack.i.bf16 %v952_v51, %v506_v55  ;;  %v1238_v45 = vrot.slane %v1224_v23, %v3334_v26 }
  0xe5   : > { %2698 = vrot.lane.b32.xlu1 %v2697_v24, %s2964_s8  ;;  %v325_v20 = vrot.slane %v4531_v19, %v3334_v26  ;;  %v1684_v15 = vrot.slane %v1670_v1, %v3334_v26  ;;  %v1469_v48 = vcombine.low %v3833_v14, %v3830_v30  ;;  %v1187_v17 = vcombine.high %v3840_v54, %v4517_v42 }
  0xe6   : > { %v1633_v32 = vcombine.high %v3845_v38, %v4517_v42  ;;  %v1931_v11 = vrot.slane %v1923_v53, %v3334_v26  ;;  %v718_v34 = vcombine.high %v3670_v28, %v3665_v22  ;;  %v1824_v24 = vcombine.high %v3616_v0, %v3643_v4  ;;  %v4535_v53 = vld [vmem:[#allocation21_spill] sm:$0xff] }
  0xe7   : > { %2713 = vrot.lane.b32.xlu0 %v2712_v27, %s2967_s11  ;;  %v2717_v50 = vpack.i.bf16 %v800_v25, %v325_v20  ;;  %v2732_v18 = vpack.i.bf16 %v1684_v15, %v1238_v45  ;;  %v1477_v63 = vrot.slane %v1469_v48, %v3334_v26  ;;  %v1808_v56 = vcombine.high %v3618_v44, %v3645_v3 }
  0xe8   : > { %v2727_v27 = vpack.i.bf16 %v1633_v32, %v1187_v17  ;;  %v1872_v55 = vcombine.high %v1854_v43, %v4517_v42  ;;  %v329_v51 = vcombine.high %v325_v20, %v4517_v42  ;;  %v804_v1 = vcombine.high %v800_v25, %v4517_v42  ;;  %v4533_v20 = vld [vmem:[#allocation20_spill] sm:$0xff] }
  0xe9   : > { %2708 = vrot.lane.b32.xlu1 %v2707_v41, %s2965_s9  ;;  %v1370_v22 = vcombine.high %v3559_v47, %v3594_v59  ;;  %v1354_v28 = vcombine.high %v3561_v49, %v3596_v60  ;;  %v2742_v0 = vpack.i.bf16 %v1931_v11, %v1477_v63  ;;  %v1418_v44 = vcombine.high %v1400_v46, %v4517_v42  ;;  %v4534_v25 = vld [vmem:[#allocation24_spill] sm:$0xff] }
  0xea   : > { %v4532_v4 = vcombine.high %v3215_v62, %v3212_v61  ;;  %v732_v43 = vrot.slane %v718_v34, %v3334_v26  ;;  %v1602_v23 = vcombine.high %v3780_v57, %v3777_v35  ;;  %v3886_v47 = vrot.slane %v1824_v24, %v3118_v29 }
  0xeb   : > { %2723 = vrot.lane.b32.xlu0 %v2722_v58, %s2968_s18  ;;  %v3889_v49 = vrot.slane %v1808_v56, %v3118_v29  ;;  %v1156_v59 = vcombine.high %v3789_v39, %v3786_v33  ;;  %v2737_v60 = vpack.i.bf16 %v1872_v55, %v1418_v44  ;;  %v1702_v61 = vcombine.high %v1684_v15, %v4517_v42 }
  0xec   : > { %v257_v3 = vrot.slane %v4532_v4, %v3334_v26  ;;  %v3896_v62 = vrot.slane %v1370_v22, %v3118_v29  ;;  %v3899_v46 = vrot.slane %v1354_v28, %v3118_v29  ;;  %v2752_v35 = vpack.i.bf16 %v804_v1, %v329_v51  ;;  %v3961_v1 = vpop.permute.xlu1 %2019  ;;  %v3968_v4 = vpop.permute.xlu0 %2015 }
  0xed   : > { %2718 = vrot.lane.b32.xlu1 %v2717_v50, %s2966_s10  ;;  %v1256_v57 = vcombine.high %v1238_v45, %v4517_v42  ;;  %v1654_v21 = vcombine.high %v3254_v7, %v3264_v9  ;;  %v1638_v33 = vcombine.high %v3257_v8, %v3267_v10  ;;  %v1616_v13 = vrot.slane %v1602_v23, %v3334_v26  ;;  %v4536_v7 = vld [vmem:[#allocation7_spill] sm:$0xff]  ;;  %v4537_v9 = vld [vmem:[#allocation6_spill] sm:$0xff] }
  0xee   : > { %v2747_v39 = vpack.i.bf16 %v732_v43, %v257_v3  ;;  %v1855_v19 = vcombine.low %v3889_v49, %v3886_v47  ;;  %v1208_v41 = vcombine.high %v4533_v20, %v3700_v40  ;;  %v1192_v58 = vcombine.high %v4535_v53, %v4534_v25 }
  0xef   : > { %2733 = vrot.lane.b32.xlu0 %v2732_v18, %s2962_s6  ;;  %v1170_v45 = vrot.slane %v1156_v59, %v3334_v26  ;;  %v1586_v15 = vcombine.high %v4537_v9, %v4536_v7  ;;  %v1570_v8 = vcombine.high %v3285_v12, %v3295_v16  ;;  %v1941_v10 = vcombine.high %v1931_v11, %v4517_v42 }
  0xf0   : > { %v1401_v48 = vcombine.low %v3899_v46, %v3896_v62  ;;  %v1140_v40 = vcombine.high %v3732_v31, %v3766_v2  ;;  %v1124_v50 = vcombine.high %v3734_v5, %v3768_v36  ;;  %v2762_v17 = vpack.i.bf16 %v1702_v61, %v1256_v57 }
  0xf1   : > { %2728 = vrot.lane.b32.xlu1 %v2727_v27, %s2964_s8  ;;  %v3929_v32 = vrot.slane %v1654_v21, %v3118_v29  ;;  %v3932_v18 = vrot.slane %v1638_v33, %v3118_v29  ;;  %v1487_v12 = vcombine.high %v1477_v63, %v4517_v42  ;;  %v3936_v16 = vrot.slane %v1208_v41, %v3118_v29  ;;  %v3993_v41 = vpop.permute.xlu0 %2023 }
  0xf2   : > { %v3939_v11 = vrot.slane %v1192_v58, %v3118_v29  ;;  %v2757_v5 = vpack.i.bf16 %v1616_v13, %v1170_v45  ;;  %v1863_v31 = vrot.slane %v1855_v19, %v3334_v26  ;;  %v3944_v2 = vrot.slane %v1586_v15, %v3118_v29 }
  0xf3   : > { %2743 = vrot.lane.b32.xlu0 %v2742_v0, %s2963_s7  ;;  %v3947_v36 = vrot.slane %v1570_v8, %v3118_v29  ;;  %v2772_v34 = vpack.i.bf16 %v1941_v10, %v1487_v12  ;;  %v1634_v63 = vcombine.high %v1616_v13, %v4517_v42  ;;  %v3951_v24 = vrot.slane %v1140_v40, %v3118_v29 }
  0xf4   : > { %v3954_v56 = vrot.slane %v1124_v50, %v3118_v29  ;;  %v1409_v27 = vrot.slane %v1401_v48, %v3334_v26  ;;  %v1188_v55 = vcombine.high %v1170_v45, %v4517_v42  ;;  %v1685_v51 = vcombine.low %v3932_v18, %v3929_v32 }
  0xf5   : > { %2738 = vrot.lane.b32.xlu1 %v2737_v60, %s2965_s9  ;;  %v1239_v22 = vcombine.low %v3939_v11, %v3936_v16  ;;  %v261_v0 = vcombine.high %v257_v3, %v4517_v42  ;;  %v736_v44 = vcombine.high %v732_v43, %v4517_v42  ;;  %v1873_v60 = vcombine.high %v1863_v31, %v4517_v42  ;;  %v4006_v7 = vpop.permute.xlu0 %2013 }
  0xf6   : > { %v2767_v28 = vpack.i.bf16 %v1863_v31, %v1409_v27  ;;  %v1171_v23 = vcombine.low %v3954_v56, %v3951_v24  ;;  %v2782_v59 = vpack.i.bf16 %v1634_v63, %v1188_v55  ;;  %v1617_v61 = vcombine.low %v3947_v36, %v3944_v2 }
  0xf7   : > { %2753 = vrot.lane.b32.xlu0 %v2752_v35, %s2968_s18  ;;  %v1693_v35 = vrot.slane %v1685_v51, %v3334_v26  ;;  %v1924_v3 = vcombine.high %v3822_v52, %v3819_v6  ;;  %v2777_v43 = vpack.i.bf16 %v736_v44, %v261_v0  ;;  %v1419_v57 = vcombine.high %v1409_v27, %v4517_v42 }
  0xf8   : > { %v1247_v21 = vrot.slane %v1239_v22, %v3334_v26  ;;  %v1856_v33 = vcombine.high %v3889_v49, %v3886_v47  ;;  %v1470_v13 = vcombine.high %v3833_v14, %v3830_v30  ;;  %v1179_v6 = vrot.slane %v1171_v23, %v3334_v26 }
  0xf9   : > { %2748 = vrot.lane.b32.xlu1 %v2747_v39, %s2966_s10  ;;  %v3984_v39 = vpop.permute.xlu1 %2027  ;;  %v2792_v19 = vpack.i.bf16 %v1873_v60, %v1419_v57  ;;  %v1625_v52 = vrot.slane %v1617_v61, %v3334_v26  ;;  %v1402_v20 = vcombine.high %v3899_v46, %v3896_v62  ;;  %v1938_v49 = vrot.slane %v1924_v3, %v3334_v26  ;;  %v2022_v27 = vpop.permute.xlu0 %2021 }
  0xfa   : > { %v2787_v47 = vpack.i.bf16 %v1693_v35, %v1247_v21  ;;  %v1870_v25 = vrot.slane %v1856_v33, %v3334_v26  ;;  %v1484_v14 = vrot.slane %v1470_v13, %v3334_v26  ;;  %v1257_v46 = vcombine.high %v1247_v21, %v4517_v42 }
  0xfb   : > { %2763 = vrot.lane.b32.xlu0 %v2762_v17, %s2965_s9  ;;  %v2802_v30 = vpack.i.bf16 %v1625_v52, %v1179_v6  ;;  %v1416_v53 = vrot.slane %v1402_v20, %v3334_v26  ;;  %v1703_v45 = vcombine.high %v1693_v35, %v4517_v42  ;;  %v1635_v9 = vcombine.high %v1625_v52, %v4517_v42 }
  0xfc   : > { %v2797_v62 = vpack.i.bf16 %v1938_v49, %v1484_v14  ;;  %v1686_v8 = vcombine.high %v3932_v18, %v3929_v32  ;;  %v1240_v10 = vcombine.high %v3939_v11, %v3936_v16  ;;  %v2105_v48 = vcombine.low %v3968_v4, %v3993_v41 }
  0xfd   : > { %2758 = vrot.lane.b32.xlu1 %v2757_v5, %s2962_s6  ;;  %v4001_v58 = vpop.permute.xlu1 %2017  ;;  %v2812_v15 = vpack.i.bf16 %v1870_v25, %v1416_v53  ;;  %v1189_v40 = vcombine.high %v1179_v6, %v4517_v42  ;;  %v2121_v50 = vcombine.low %v3961_v1, %v3984_v39  ;;  %v1942_v17 = vcombine.high %v1938_v49, %v4517_v42 }
  0xfe   : > { %v2807_v12 = vpack.i.bf16 %v1703_v45, %v1257_v46  ;;  %v1874_v32 = vcombine.high %v1870_v25, %v4517_v42  ;;  %v1488_v18 = vcombine.high %v1484_v14, %v4517_v42  ;;  %v1700_v11 = vrot.slane %v1686_v8, %v3334_v26 }
  0xff   : > { %2773 = vrot.lane.b32.xlu0 %v2772_v34, %s2967_s11  ;;  %v1254_v5 = vrot.slane %v1240_v10, %v3334_v26  ;;  %v2113_v31 = vrot.slane %v2105_v48, %v3118_v29  ;;  %v2129_v34 = vrot.slane %v2121_v50, %v3118_v29  ;;  %v2822_v63 = vpack.i.bf16 %v1635_v9, %v1189_v40 }
 0x100   : > { %v2817_v55 = vpack.i.bf16 %v1942_v17, %v1488_v18  ;;  %v1618_v51 = vcombine.high %v3947_v36, %v3944_v2  ;;  %v1172_v22 = vcombine.high %v3954_v56, %v3951_v24  ;;  %v1420_v0 = vcombine.high %v1416_v53, %v4517_v42 }
 0x101   : > { %2768 = vrot.lane.b32.xlu1 %v2767_v28, %s2963_s7  ;;  %v2026_v16 = vpop.permute.xlu1 %2025  ;;  %v2037_v28 = vcombine.low %v4006_v7, %v2022_v27  ;;  %v2137_v23 = vcombine.low %v2113_v31, %v2129_v34  ;;  %v1258_v60 = vcombine.high %v1254_v5, %v4517_v42  ;;  %v1704_v61 = vcombine.high %v1700_v11, %v4517_v42 }
 0x102   : > { %v2053_v44 = vcombine.low %v4001_v58, %v2026_v16  ;;  %v1632_v2 = vrot.slane %v1618_v51, %v3334_v26  ;;  %v1186_v36 = vrot.slane %v1172_v22, %v3334_v26  ;;  %v2827_v35 = vpack.i.bf16 %v1700_v11, %v1254_v5  ;;  %v4539_v5 = vld [vmem:[#allocation9_spill] sm:$0xff] }
 0x103   : > { %2783 = vrot.lane.b32.xlu0 %v2782_v59, %s2965_s9  ;;  %v2832_v59 = vpack.i.bf16 %v1874_v32, %v1420_v0  ;;  %v2045_v24 = vrot.slane %v2037_v28, %v3118_v29  ;;  %v4045_v3 = vrot.slane %v2137_v23, %v3334_v26  ;;  %v2122_v6 = vcombine.high %v3961_v1, %v3984_v39 }
 0x104   : > { %v2061_v56 = vrot.slane %v2053_v44, %v3118_v29  ;;  %v2837_v21 = vpack.i.bf16 %v1632_v2, %v1186_v36  ;;  %v1190_v33 = vcombine.high %v1186_v36, %v4517_v42  ;;  %v1636_v13 = vcombine.high %v1632_v2, %v4517_v42 }
 0x105   : > { %2778 = vrot.lane.b32.xlu1 %v2777_v43, %s2968_s18  ;;  %v2842_v43 = vpack.i.bf16 %v1704_v61, %v1258_v60  ;;  %v2138_v52 = vcombine.high %v2113_v31, %v2129_v34  ;;  %v2169_v20 = vcombine.high %v4045_v3, %v4517_v42  ;;  %v2038_v39 = vcombine.high %v4006_v7, %v2022_v27 }
 0x106   : > { %v2069_v57 = vcombine.low %v2045_v24, %v2061_v56  ;;  %v2847_v49 = vpack.i.bf16 %v1636_v13, %v1190_v33  ;;  %v2054_v14 = vcombine.high %v4001_v58, %v2026_v16  ;;  %v2070_v53 = vcombine.high %v2045_v24, %v2061_v56  ;;  %v4538_v16 = vld [vmem:[#allocation8_spill] sm:$0xff] }
 0x107   : > { %2793 = vrot.lane.b32.xlu0 %v2792_v19, %s2967_s11  ;;  %v2106_v19 = vcombine.high %v3968_v4, %v3993_v41  ;;  %v2152_v1 = vrot.slane %v2138_v52, %v3334_v26  ;;  %v2052_v8 = vrot.slane %v2038_v39, %v3118_v29  ;;  %v2969_v61 = vmov 0  }
 0x108   : > { %v2068_v7 = vrot.slane %v2054_v14, %v3118_v29  ;;  %v2084_v58 = vrot.slane %v2070_v53, %v3334_v26  ;;  %2852 = vset.pattern.permute.xlu0 %v2969_v61 }
 0x109   : > { %2788 = vrot.lane.b32.xlu1 %v2787_v47, %s2963_s7  ;;  %v4059_v47 = vrot.slane %v2069_v57, %v3334_v26  ;;  %v2120_v25 = vrot.slane %v2106_v19, %v3118_v29 }
 0x10b   : > { %2803 = vrot.lane.b32.xlu0 %v2802_v30, %s2963_s7  ;;  %v2136_v30 = vrot.slane %v2122_v6, %v3118_v29  ;;  %v2102_v29 = vcombine.high %v2084_v58, %v4517_v42 }
 0x10d   : > { %2798 = vrot.lane.b32.xlu1 %v2797_v62, %s2966_s10  ;;  %v2101_v62 = vcombine.high %v4059_v47, %v4517_v42  ;;  %v2153_v46 = vcombine.low %v2120_v25, %v2136_v30  ;;  %v2154_v34 = vcombine.high %v2120_v25, %v2136_v30 }
 0x10f   : > { %2813 = vrot.lane.b32.xlu0 %v2812_v15, %s2966_s10  ;;  %v2170_v15 = vcombine.high %v2152_v1, %v4517_v42  ;;  %v2161_v40 = vrot.slane %v2153_v46, %v3334_v26  ;;  %v2168_v23 = vrot.slane %v2154_v34, %v3334_v26 }
 0x111   : > { %2808 = vrot.lane.b32.xlu1 %v2807_v12, %s2967_s11  ;;  %v4064_v4 = vpop.permute.xlu0 %2573  ;;  %v2085_v12 = vcombine.low %v2052_v8, %v2068_v7  ;;  %v2172_v24 = vcombine.high %v2168_v23, %v4517_v42 }
 0x113   : > { %2823 = vrot.lane.b32.xlu0 %v2822_v63, %s2967_s11  ;;  %v2093_v28 = vrot.slane %v2085_v12, %v3334_v26 }
 0x115   : > { %2818 = vrot.lane.b32.xlu1 %v2817_v55, %s2968_s18  ;;  %v2171_v55 = vcombine.high %v2161_v40, %v4517_v42  ;;  %v2103_v60 = vcombine.high %v2093_v28, %v4517_v42 }
 0x117   : > { %2833 = vrot.lane.b32.xlu0 %v2832_v59, %s2968_s18  ;;  %v2086_v59 = vcombine.high %v2052_v8, %v2068_v7 }
 0x119   : > { %2828 = vrot.lane.b32.xlu1 %v2827_v35, %s2966_s10  ;;  %v2579_v45 = vpop.permute.xlu0 %2578  ;;  %v2100_v56 = vrot.slane %v2086_v59, %v3334_v26  ;;  %v2277_v35 = vld [vmem:[%s4472_s2] sm:$0xff] }
 0x11a   : > { %v2581_v32 = vunpack.i.h.bf16 %v2579_v45  ;;  %v2580_v18 = vunpack.i.l.bf16 %v2579_v45 }
 0x11b   : > { %2843 = vrot.lane.b32.xlu0 %v2842_v43, %s2968_s18 }
 0x11d   : > { %2838 = vrot.lane.b32.xlu1 %v2837_v21, %s2966_s10  ;;  %v2104_v21 = vcombine.high %v2100_v56, %v4517_v42 }
 0x11f   : > { %2202 = vrot.lane.b32.xlu0 %v2169_v20, %s2964_s8 }
 0x121   : > { %v4066_v41 = vpop.permute.xlu1 %2583  ;;  %2848 = vrot.lane.b32.xlu1 %v2847_v49, %s2968_s18 }
 0x123   : > { %2206 = vrot.lane.b32.xlu0 %v2152_v1, %s2962_s6 }
 0x125   : > { %v4075_v9 = vpop.permute.xlu1 %2588  ;;  %2174 = vrot.lane.b32.xlu1 %v2101_v62, %s2964_s8  ;;  %s2369_s8 = scalar_lea.sflag [#allocation3], %s175_s27 }
 0x127   : > { %2210 = vrot.lane.b32.xlu0 %v2170_v15, %s2965_s9 }
 0x129   : > { %v2619_v10 = vpop.permute.xlu1 %2618  ;;  %v4083_v48 = vpop.permute.xlu0 %2593  ;;  %2178 = vrot.lane.b32.xlu1 %v2084_v58, %s2962_s6 }
 0x12a   : > { %v2621_v50 = vunpack.i.h.bf16 %v2619_v10  ;;  %v2620_v17 = vunpack.i.l.bf16 %v2619_v10 }
 0x12b   : > { %2214 = vrot.lane.b32.xlu0 %v2161_v40, %s2963_s7  ;;  %v4540_v40 = vld [vmem:[#allocation14_spill] sm:$0xff] }
 0x12c   : > { %v1077_v11 = vsel %vm386_vm0, %v4538_v16, %v2621_v50  ;;  %v631_v31 = vsel %vm386_vm0, %v4539_v5, %v2620_v17  ;;  %v4541_v17 = vld [vmem:[#allocation15_spill] sm:$0xff] }
 0x12d   : > { %v4093_v63 = vpop.permute.xlu1 %2623  ;;  %v2599_v27 = vpop.permute.xlu0 %2598  ;;  %2182 = vrot.lane.b32.xlu1 %v2102_v29, %s2965_s9  ;;  %v632_v51 = vsel %vm388_vm1, %v631_v31, %v2580_v18  ;;  %v1078_v22 = vsel %vm388_vm1, %v1077_v11, %v2581_v32  ;;  %v2576_v32 = vunpack.i.h.bf16 %v4064_v4  ;;  %v2575_v18 = vunpack.i.l.bf16 %v4064_v4  ;;  %s2877_s9 = scalar_lea.vmem %s4425_s4, 256 }
 0x12e   : > { %v2601_v52 = vunpack.i.h.bf16 %v2599_v27  ;;  %v2600_v20 = vunpack.i.l.bf16 %v2599_v27  ;;  %v2626_v31 = vunpack.i.h.bf16 %v4093_v63  ;;  %v2625_v34 = vunpack.i.l.bf16 %v4093_v63  ;;  %v4543_v63 = vld [vmem:[#allocation10_spill] sm:$0xff]  ;;  %p2878_p12 = scmp.ne.s32.totalorder %s4425_s4, %s2877_s9 }
 0x12f   : > { %2218 = vrot.lane.b32.xlu0 %v2171_v55, %s2967_s11 }
 0x130   : > { %p2879_p13 = pnand %p2878_p12, %p3031_p4 }
 0x131   : > { %v4101_v0 = vpop.permute.xlu1 %2628  ;;  %v4103_v44 = vpop.permute.xlu0 %2603  ;;  %2186 = vrot.lane.b32.xlu1 %v2093_v28, %s2963_s7  ;;  %v2591_v28 = vunpack.i.h.bf16 %v4075_v9  ;;  %s4423_s7 = scalar_lea.hbm %s4473_s3, %s2494_s29 }
 0x132   : > { %v2631_v27 = vunpack.i.h.bf16 %v4101_v0  ;;  %v2630_v55 = vunpack.i.l.bf16 %v4101_v0  ;;  %v2586_v0 = vunpack.i.h.bf16 %v4066_v41  ;;  %p2880_p0 = pneg %p2879_p13 }
 0x133   : > { %2222 = vrot.lane.b32.xlu0 %v2168_v23, %s2966_s10  ;;  %v2590_v23 = vunpack.i.l.bf16 %v4075_v9 }
 0x135   : > { %v4109_v2 = vpop.permute.xlu1 %2643  ;;  %v4111_v36 = vpop.permute.xlu0 %2608  ;;  %2190 = vrot.lane.b32.xlu1 %v2103_v60, %s2967_s11  ;;  %v4542_v60 = vld [vmem:[#allocation13_spill] sm:$0xff] }
 0x136   : > { %v868_v61 = vsel %vm386_vm0, %v4542_v60, %v2626_v31 }
 0x137   : > { %2226 = vrot.lane.b32.xlu0 %v2172_v24, %s2968_s18  ;;  %v400_v24 = vsel %vm386_vm0, %v4543_v63, %v2625_v34 }
 0x139   : > { %v2614_v43 = vpop.permute.xlu0 %2613  ;;  %2194 = vrot.lane.b32.xlu1 %v2100_v56, %s2966_s10  ;;  %v4121_v57 = vpop.permute.xlu1 %2648  ;;  %v2585_v56 = vunpack.i.l.bf16 %v4066_v41  ;;  %s2881_s10 = sshll.u32 %s2970_s15, 4  ;;  %s2882_s10 = int_to_ptr.vmem [resolvable:$false] %s2881_s10 }
 0x13a   : > { %v2616_v8 = vunpack.i.h.bf16 %v2614_v43  ;;  %v2615_v7 = vunpack.i.l.bf16 %v2614_v43  ;;  %s2883_s11 = scalar_lea.vmem %s2882_s10, 512  ;;  %p2884_p1 = scmp.lt.s32.totalorder %s4425_s4, %s2882_s10 }
 0x13b   : > { %2280 = vperm.xlu0 %2852, %v2277_v35   ;;  %v401_v41 = vsel %vm388_vm1, %v400_v24, %v2585_v56  ;;  %p2885_p2 = scmp.lt.s32.totalorder %s2883_s11, %s2877_s9 }
 0x13c   : > { %v1084_v50 = vsel %vm386_vm0, %v4540_v40, %v2616_v8  ;;  %v638_v12 = vsel %vm386_vm0, %v4541_v17, %v2615_v7 }
 0x13d   : > { %2198 = vrot.lane.b32.xlu1 %v2104_v21, %s2968_s18  ;;  %v4125_v33 = vpop.permute.xlu0 %2633  ;;  %v4127_v13 = vpop.permute.xlu1 %2663  ;;  %v1085_v16 = vsel %vm388_vm1, %v1084_v50, %v2576_v32  ;;  %v639_v11 = vsel %vm388_vm1, %v638_v12, %v2575_v18  ;;  %v2646_v21 = vunpack.i.h.bf16 %v4109_v2  ;;  %v2610_v50 = vunpack.i.l.bf16 %v4111_v36  ;;  %p2886_p3 = por %p2885_p2, %p2884_p1 }
 0x13e   : > { %v1086_v4 = vsel %vm390_vm2, %v1085_v16, %v2631_v27  ;;  %v2635_v17 = vunpack.i.l.bf16 %v4125_v33 }
 0x13f   : > { %v1087_v9 = vsel %vm392_vm3, %v1086_v4, %v2591_v28  ;;  %p2887_p5 = pnand %p2886_p3, %p2880_p0 }
 0x141   : > { %v2639_v19 = vpop.permute.xlu0 %2638  ;;  %v4139_v39 = vpop.permute.xlu1 %2668 }
 0x142   : > { %v2641_v26 = vunpack.i.h.bf16 %v2639_v19  ;;  %v2640_v6 = vunpack.i.l.bf16 %v2639_v19  ;;  %v2645_v19 = vunpack.i.l.bf16 %v4109_v2 }
 0x144   : > { %v1079_v49 = vsel %vm390_vm2, %v1078_v22, %v2641_v26  ;;  %v633_v25 = vsel %vm390_vm2, %v632_v51, %v2640_v6  ;;  %v640_v22 = vsel %vm390_vm2, %v639_v11, %v2630_v55  ;;  %v2651_v26 = vunpack.i.h.bf16 %v4121_v57 }
 0x145   : > { %v4131_v30 = vpop.permute.xlu0 %2653  ;;  %v4134_v42 = vsel %vm392_vm3, %v1079_v49, %v2601_v52  ;;  %v4137_v1 = vsel %vm392_vm3, %v633_v25, %v2600_v20  ;;  %v641_v43 = vsel %vm392_vm3, %v640_v22, %v2590_v23  ;;  %v2650_v6 = vunpack.i.l.bf16 %v4121_v57  ;;  %v4544_v22 = vld [vmem:[#allocation17_spill] sm:$0xff]  ;;  %v4545_v23 = vld [vmem:[#allocation16_spill] sm:$0xff] }
 0x146   : > { %v2606_v52 = vunpack.i.h.bf16 %v4103_v44  ;;  %v2605_v20 = vunpack.i.l.bf16 %v4103_v44  ;;  %v869_v49 = vsel %vm388_vm1, %v868_v61, %v2586_v0  ;;  %v1088_v40 = vsel %vm394_vm4, %v1087_v9, %v2651_v26 }
 0x147   : > { %v642_v2 = vsel %vm394_vm4, %v641_v43, %v2650_v6  ;;  %v2611_v57 = vunpack.i.h.bf16 %v4111_v36  ;;  %v2636_v44 = vunpack.i.h.bf16 %v4125_v33  ;;  %v402_v32 = vsel %vm390_vm2, %v401_v41, %v2645_v19 }
 0x148   : > { %v870_v18 = vsel %vm390_vm2, %v869_v49, %v2646_v21  ;;  %v643_v36 = vsel %vm396_vm5, %v642_v2, %v2610_v50  ;;  %v2595_v33 = vunpack.i.l.bf16 %v4083_v48  ;;  %v2596_v6 = vunpack.i.h.bf16 %v4083_v48 }
 0x149   : > { %v4141_v14 = vpop.permute.xlu0 %2658  ;;  %v1089_v27 = vsel %vm396_vm5, %v1088_v40, %v2611_v57  ;;  %v861_v28 = vsel %vm386_vm0, %v4544_v22, %v2636_v44  ;;  %v871_v60 = vsel %vm392_vm3, %v870_v18, %v2606_v52  ;;  %v2666_v2 = vunpack.i.h.bf16 %v4127_v13 }
 0x14a   : > { %v2665_v40 = vunpack.i.l.bf16 %v4127_v13  ;;  %v862_v57 = vsel %vm388_vm1, %v861_v28, %v2596_v6  ;;  %v2670_v48 = vunpack.i.l.bf16 %v4139_v39  ;;  %v2656_v50 = vunpack.i.h.bf16 %v4131_v30  ;;  %v4547_v28 = vld [vmem:[#allocation19_spill] sm:$0xff] }
 0x14b   : > { %v4143_v53 = vpop.permute.xlu1 %2673  ;;  %v2655_v44 = vunpack.i.l.bf16 %v4131_v30  ;;  %v2671_v18 = vunpack.i.h.bf16 %v4139_v39 }
 0x14d   : > { %v4145_v62 = vpop.permute.xlu0 %2683  ;;  %v1081_v39 = vsel %vm394_vm4, %v4134_v42, %v2671_v18 }
 0x14e   : > { %v2685_v16 = vunpack.i.l.bf16 %v4145_v62 }
 0x14f   : > { %v4147_v46 = vpop.permute.xlu1 %2678 }
 0x151   : > { %v4149_v45 = vpop.permute.xlu0 %2693 }
 0x152   : > { %v2696_v8 = vunpack.i.h.bf16 %v4149_v45  ;;  %v2695_v7 = vunpack.i.l.bf16 %v4149_v45  ;;  %v2686_v45 = vunpack.i.h.bf16 %v4145_v62  ;;  %v387_v62 = vsel %vm386_vm0, %v4545_v23, %v2635_v17 }
 0x153   : > { %v4151_v15 = vpop.permute.xlu1 %2688  ;;  %v389_v41 = vsel %vm388_vm1, %v387_v62, %v2595_v33  ;;  %v2680_v23 = vunpack.i.l.bf16 %v4147_v46 }
 0x154   : > { %v644_v55 = vsel %vm398_vm6, %v643_v36, %v2695_v7  ;;  %v1090_v4 = vsel %vm398_vm6, %v1089_v27, %v2696_v8  ;;  %v872_v63 = vsel %vm394_vm4, %v871_v60, %v2686_v45  ;;  %v2660_v45 = vunpack.i.l.bf16 %v4141_v14 }
 0x155   : > { %v4153_v58 = vpop.permute.xlu0 %2703  ;;  %v2246_v19 = vrot.slane %v644_v55, 4  ;;  %v2252_v26 = vrot.slane %v1090_v4, 4  ;;  %v2691_v13 = vunpack.i.h.bf16 %v4151_v15  ;;  %v635_v36 = vsel %vm394_vm4, %v4137_v1, %v2670_v48  ;;  %v4546_v4 = vld [vmem:[#allocation18_spill] sm:$0xff] }
 0x156   : > { %v2676_v27 = vunpack.i.h.bf16 %v4143_v53  ;;  %v2006_v22 = vsel %vm386_vm0, %v4546_v4, %v2656_v50  ;;  %v2681_v1 = vunpack.i.h.bf16 %v4147_v46  ;;  %v4548_v46 = vld [vmem:[#allocation23_spill] sm:$0xff]  ;;  %v2706_v6 = vunpack.i.h.bf16 %v4153_v58 }
 0x157   : > { %v4155_v10 = vpop.permute.xlu1 %2698 }
 0x158   : > { %v2701_v50 = vunpack.i.h.bf16 %v4155_v10 }
 0x159   : > { %v4163_v29 = vpop.permute.xlu0 %2713 }
 0x15a   : > { %v2716_v60 = vunpack.i.h.bf16 %v4163_v29 }
 0x15b   : > { %v4167_v5 = vpop.permute.xlu1 %2708 }
 0x15c   : > { %v2711_v18 = vunpack.i.h.bf16 %v4167_v5 }
 0x15d   : > { %v4173_v51 = vpop.permute.xlu0 %2723 }
 0x15e   : > { %v2726_v33 = vunpack.i.h.bf16 %v4173_v51  ;;  %v2725_v55 = vunpack.i.l.bf16 %v4173_v51  ;;  %v2715_v51 = vunpack.i.l.bf16 %v4163_v29 }
 0x15f   : > { %v2719_v59 = vpop.permute.xlu1 %2718 }
 0x160   : > { %v2721_v11 = vunpack.i.h.bf16 %v2719_v59  ;;  %v2720_v31 = vunpack.i.l.bf16 %v2719_v59  ;;  %v403_v59 = vsel %vm392_vm3, %v402_v32, %v2605_v20 }
 0x161   : > { %v4185_v35 = vpop.permute.xlu0 %2733  ;;  %v404_v24 = vsel %vm394_vm4, %v403_v59, %v2685_v16  ;;  %v391_v16 = vsel %vm390_vm2, %v389_v41, %v2665_v40  ;;  %v2661_v59 = vunpack.i.h.bf16 %v4141_v14  ;;  %v2675_v14 = vunpack.i.l.bf16 %v4143_v53 }
 0x162   : > { %v405_v9 = vsel %vm396_vm5, %v404_v24, %v2720_v31  ;;  %v873_v21 = vsel %vm396_vm5, %v872_v63, %v2721_v11  ;;  %v863_v11 = vsel %vm390_vm2, %v862_v57, %v2666_v2  ;;  %v2690_v31 = vunpack.i.l.bf16 %v4151_v15 }
 0x163   : > { %v4197_v25 = vpop.permute.xlu1 %2728  ;;  %v1552_v15 = vsel %vm386_vm0, %v4547_v28, %v2655_v44  ;;  %v1082_v63 = vsel %vm396_vm5, %v1081_v39, %v2691_v13  ;;  %v393_v29 = vsel %vm392_vm3, %v391_v16, %v2680_v23  ;;  %v2700_v44 = vunpack.i.l.bf16 %v4155_v10 }
 0x164   : > { %v1553_v42 = vsel %vm388_vm1, %v1552_v15, %v2660_v45  ;;  %v2710_v45 = vunpack.i.l.bf16 %v4167_v5  ;;  %v2736_v39 = vunpack.i.h.bf16 %v4185_v35  ;;  %v2731_v5 = vunpack.i.h.bf16 %v4197_v25 }
 0x165   : > { %v4207_v12 = vpop.permute.xlu0 %2743  ;;  %v1768_v15 = vsel %vm386_vm0, %v3758_v37, %v2701_v50  ;;  %v2730_v23 = vunpack.i.l.bf16 %v4197_v25 }
 0x167   : > { %v4213_v34 = vpop.permute.xlu1 %2738 }
 0x168   : > { %v2741_v37 = vunpack.i.h.bf16 %v4213_v34 }
 0x169   : > { %v2754_v61 = vpop.permute.xlu0 %2753 }
 0x16a   : > { %v2756_v0 = vunpack.i.h.bf16 %v2754_v61  ;;  %v2755_v56 = vunpack.i.l.bf16 %v2754_v61  ;;  %v636_v61 = vsel %vm396_vm5, %v635_v36, %v2690_v31  ;;  %v2007_v31 = vsel %vm388_vm1, %v2006_v22, %v2661_v59  ;;  %v4549_v36 = vld [vmem:[#allocation22_spill] sm:$0xff]  ;;  %v4550_v22 = vld [vmem:[#allocation25_spill] sm:$0xff] }
 0x16b   : > { %v4228_v43 = vpop.permute.xlu1 %2748  ;;  %v2745_v59 = vunpack.i.l.bf16 %v4207_v12 }
 0x16c   : > { %v406_v20 = vsel %vm398_vm6, %v405_v9, %v2755_v56  ;;  %v874_v52 = vsel %vm398_vm6, %v873_v21, %v2756_v0  ;;  %v2751_v24 = vunpack.i.h.bf16 %v4228_v43  ;;  %v2750_v0 = vunpack.i.l.bf16 %v4228_v43 }
 0x16d   : > { %v4236_v49 = vpop.permute.xlu0 %2763  ;;  %v2269_v8 = vsel %vm2267_vm7, %v406_v20, %v2246_v19  ;;  %v2271_v7 = vsel %vm2267_vm7, %v874_v52, %v2252_v26  ;;  %v1999_v9 = vsel %vm386_vm0, %v4548_v46, %v2676_v27  ;;  %v637_v21 = vsel %vm398_vm6, %v636_v61, %v2725_v55 }
 0x16e   : > { %v2495_v32 = vpack.c.bf16 %v2271_v7, %v2269_v8  ;;  %v1083_v19 = vsel %vm398_vm6, %v1082_v63, %v2726_v33  ;;  %v864_v26 = vsel %vm392_vm3, %v863_v11, %v2681_v1  ;;  %v2705_v20 = vunpack.i.l.bf16 %v4153_v58 }
 0x16f   : > { %v4246_v17 = vpop.permute.xlu1 %2758  ;;  %v395_v52 = vsel %vm394_vm4, %v393_v29, %v2715_v51  ;;  %v865_v41 = vsel %vm394_vm4, %v864_v26, %v2716_v60  ;;  %v2245_v53 = vrot.slane %v637_v21, 4  ;;  %v2251_v2 = vrot.slane %v1083_v19, 4 }
 0x170   : > { %2496 = vmatprep.subr.bf16.mxu0 %v2495_v32  ;;  %v397_v40 = vsel %vm396_vm5, %v395_v52, %v2750_v0  ;;  %v866_v57 = vsel %vm396_vm5, %v865_v41, %v2751_v24  ;;  %v1545_v27 = vsel %vm386_vm0, %v4549_v36, %v2675_v14  ;;  %v2000_v10 = vsel %vm388_vm1, %v1999_v9, %v2706_v6 }
 0x171   : > { %v4256_v30 = vpop.permute.xlu0 %2773  ;;  %v1546_v33 = vsel %vm388_vm1, %v1545_v27, %v2705_v20  ;;  %v2735_v55 = vunpack.i.l.bf16 %v4185_v35  ;;  %v1322_v1 = vsel %vm386_vm0, %v4550_v22, %v2700_v44  ;;  %v1554_v60 = vsel %vm390_vm2, %v1553_v42, %v2710_v45 }
 0x172   : > { %v2008_v51 = vsel %vm390_vm2, %v2007_v31, %v2711_v18  ;;  %v2746_v35 = vunpack.i.h.bf16 %v4207_v12  ;;  %v2740_v61 = vunpack.i.l.bf16 %v4213_v34  ;;  %v1769_v24 = vsel %vm388_vm1, %v1768_v15, %v2736_v39 }
 0x173   : > { %v4269_v62 = vpop.permute.xlu1 %2768  ;;  %v2766_v0 = vunpack.i.h.bf16 %v4236_v49  ;;  %v2765_v25 = vunpack.i.l.bf16 %v4236_v49  ;;  %v1323_v46 = vsel %vm388_vm1, %v1322_v1, %v2735_v55  ;;  %v1761_v42 = vsel %vm386_vm0, %v3845_v38, %v2731_v5 }
 0x174   : > { %v2761_v9 = vunpack.i.h.bf16 %v4246_v17  ;;  %v2760_v12 = vunpack.i.l.bf16 %v4246_v17  ;;  %v1315_v21 = vsel %vm386_vm0, %v3840_v54, %v2730_v23  ;;  %v1555_v19 = vsel %vm392_vm3, %v1554_v60, %v2745_v59 }
 0x175   : > { %v4279_v56 = vpop.permute.xlu0 %2783  ;;  %v2776_v34 = vunpack.i.h.bf16 %v4256_v30  ;;  %v2775_v29 = vunpack.i.l.bf16 %v4256_v30  ;;  %v2009_v49 = vsel %vm392_vm3, %v2008_v51, %v2746_v35  ;;  %v1547_v26 = vsel %vm390_vm2, %v1546_v33, %v2740_v61 }
 0x176   : > { %v2771_v38 = vunpack.i.h.bf16 %v4269_v62  ;;  %v2770_v6 = vunpack.i.l.bf16 %v4269_v62  ;;  %v2001_v17 = vsel %vm390_vm2, %v2000_v10, %v2741_v37  ;;  %v1770_v54 = vsel %vm390_vm2, %v1769_v24, %v2766_v0 }
 0x177   : > { %v2779_v43 = vpop.permute.xlu1 %2778  ;;  %v2786_v52 = vunpack.i.h.bf16 %v4279_v56  ;;  %v1316_v41 = vsel %vm388_vm1, %v1315_v21, %v2760_v12  ;;  %v1762_v30 = vsel %vm388_vm1, %v1761_v42, %v2761_v9  ;;  %v1556_v62 = vsel %vm394_vm4, %v1555_v19, %v2775_v29 }
 0x178   : > { %v2781_v8 = vunpack.i.h.bf16 %v2779_v43  ;;  %v2780_v7 = vunpack.i.l.bf16 %v2779_v43  ;;  %v1324_v43 = vsel %vm390_vm2, %v1323_v46, %v2765_v25  ;;  %v1548_v50 = vsel %vm392_vm3, %v1547_v26, %v2770_v6 }
 0x179   : > { %v4294_v48 = vpop.permute.xlu0 %2793  ;;  %v2002_v44 = vsel %vm392_vm3, %v2001_v17, %v2771_v38  ;;  %v1763_v45 = vsel %vm390_vm2, %v1762_v30, %v2786_v52 }
 0x17a   : > { %v399_v58 = vsel %vm398_vm6, %v397_v40, %v2780_v7  ;;  %v867_v32 = vsel %vm398_vm6, %v866_v57, %v2781_v8  ;;  %v2796_v8 = vunpack.i.h.bf16 %v4294_v48  ;;  %v2795_v7 = vunpack.i.l.bf16 %v4294_v48 }
 0x17b   : > { %v4302_v16 = vpop.permute.xlu1 %2788  ;;  %v2268_v11 = vsel %vm2267_vm7, %v399_v58, %v2245_v53  ;;  %v2270_v13 = vsel %vm2267_vm7, %v867_v32, %v2251_v2  ;;  %v2010_v2 = vsel %vm394_vm4, %v2009_v49, %v2776_v34  ;;  %v2785_v48 = vunpack.i.l.bf16 %v4279_v56 }
 0x17c   : > { %v2497_v28 = vpack.c.bf16 %v2270_v13, %v2268_v11  ;;  %v2791_v40 = vunpack.i.h.bf16 %v4302_v16  ;;  %v2790_v57 = vunpack.i.l.bf16 %v4302_v16  ;;  %v1549_v31 = vsel %vm394_vm4, %v1548_v50, %v2795_v7 }
 0x17d   : > { %v4314_v4 = vpop.permute.xlu0 %2803  ;;  %v2003_v36 = vsel %vm394_vm4, %v2002_v44, %v2796_v8 }
 0x17e   : > { %2498 = vmatpush1.bf16.msra.mxu0 %v2497_v28  ;;  %v1325_v39 = vsel %vm392_vm3, %v1324_v43, %v2790_v57  ;;  %v1771_v33 = vsel %vm392_vm3, %v1770_v54, %v2791_v40  ;;  %v2806_v55 = vunpack.i.h.bf16 %v4314_v4  ;;  %v2805_v5 = vunpack.i.l.bf16 %v4314_v4 }
 0x17f   : > { %v2799_v63 = vpop.permute.xlu1 %2798  ;;  %v1317_v43 = vsel %vm390_vm2, %v1316_v41, %v2785_v48 }
 0x180   : > { %v2801_v58 = vunpack.i.h.bf16 %v2799_v63  ;;  %v2800_v32 = vunpack.i.l.bf16 %v2799_v63  ;;  %v1318_v8 = vsel %vm392_vm3, %v1317_v43, %v2805_v5  ;;  %v1764_v7 = vsel %vm392_vm3, %v1763_v45, %v2806_v55 }
 0x181   : > { %v2814_v14 = vpop.permute.xlu0 %2813 }
 0x182   : > { %v1557_v28 = vsel %vm396_vm5, %v1556_v62, %v2800_v32  ;;  %v2011_v56 = vsel %vm396_vm5, %v2010_v2, %v2801_v58  ;;  %v2816_v15 = vunpack.i.h.bf16 %v2814_v14  ;;  %v2815_v22 = vunpack.i.l.bf16 %v2814_v14 }
 0x183   : > { %v2809_v20 = vpop.permute.xlu1 %2808 }
 0x184   : > { %v2811_v27 = vunpack.i.h.bf16 %v2809_v20  ;;  %v2810_v10 = vunpack.i.l.bf16 %v2809_v20  ;;  %v1550_v42 = vsel %vm396_vm5, %v1549_v31, %v2815_v22  ;;  %v2004_v9 = vsel %vm396_vm5, %v2003_v36, %v2816_v15 }
 0x185   : > { %v4352_v53 = vpop.permute.xlu0 %2823 }
 0x186   : > { %v1326_v35 = vsel %vm394_vm4, %v1325_v39, %v2810_v10  ;;  %v1772_v61 = vsel %vm394_vm4, %v1771_v33, %v2811_v27  ;;  %v2826_v19 = vunpack.i.h.bf16 %v4352_v53  ;;  %v2825_v34 = vunpack.i.l.bf16 %v4352_v53 }
 0x187   : > { %v2819_v18 = vpop.permute.xlu1 %2818 }
 0x188   : > { %v2821_v11 = vunpack.i.h.bf16 %v2819_v18  ;;  %v2820_v13 = vunpack.i.l.bf16 %v2819_v18  ;;  %v1319_v62 = vsel %vm394_vm4, %v1318_v8, %v2825_v34  ;;  %v1765_v2 = vsel %vm394_vm4, %v1764_v7, %v2826_v19 }
 0x189   : > { %v2834_v16 = vpop.permute.xlu0 %2833 }
 0x18a   : > { %v1558_v23 = vsel %vm398_vm6, %v1557_v28, %v2820_v13  ;;  %v2012_v59 = vsel %vm398_vm6, %v2011_v56, %v2821_v11  ;;  %v2836_v63 = vunpack.i.h.bf16 %v2834_v16  ;;  %v2835_v24 = vunpack.i.l.bf16 %v2834_v16 }
 0x18b   : > { %v2829_v1 = vpop.permute.xlu1 %2828  ;;  %v2258_v12 = vrot.slane %v1558_v23, 4  ;;  %v2264_v14 = vrot.slane %v2012_v59, 4 }
 0x18c   : > { %v2831_v60 = vunpack.i.h.bf16 %v2829_v1  ;;  %v2830_v51 = vunpack.i.l.bf16 %v2829_v1  ;;  %v1551_v54 = vsel %vm398_vm6, %v1550_v42, %v2835_v24  ;;  %v2005_v52 = vsel %vm398_vm6, %v2004_v9, %v2836_v63 }
 0x18d   : > { %v2844_v4 = vpop.permute.xlu0 %2843  ;;  %v2257_v50 = vrot.slane %v1551_v54, 4  ;;  %v2263_v44 = vrot.slane %v2005_v52, 4 }
 0x18e   : > { %v1327_v37 = vsel %vm396_vm5, %v1326_v35, %v2830_v51  ;;  %v1773_v0 = vsel %vm396_vm5, %v1772_v61, %v2831_v60  ;;  %v2846_v25 = vunpack.i.h.bf16 %v2844_v4  ;;  %v2845_v46 = vunpack.i.l.bf16 %v2844_v4 }
 0x18f   : > { %v2839_v21 = vpop.permute.xlu1 %2838 }
 0x190   : > { %v1328_v29 = vsel %vm398_vm6, %v1327_v37, %v2845_v46  ;;  %v1774_v49 = vsel %vm398_vm6, %v1773_v0, %v2846_v25  ;;  %v2841_v26 = vunpack.i.h.bf16 %v2839_v21  ;;  %v2840_v38 = vunpack.i.l.bf16 %v2839_v21 }
 0x191   : > { %v2203_v6 = vpop.permute.xlu0 %2202  ;;  %v2273_v20 = vsel %vm2267_vm7, %v1328_v29, %v2258_v12  ;;  %v2275_v17 = vsel %vm2267_vm7, %v1774_v49, %v2264_v14 }
 0x192   : > { %v2499_v30 = vpack.c.bf16 %v2275_v17, %v2273_v20  ;;  %v1320_v41 = vsel %vm396_vm5, %v1319_v62, %v2840_v38  ;;  %v1766_v58 = vsel %vm396_vm5, %v1765_v2, %v2841_v26  ;;  %v2236_v55 = vsel %vm386_vm0, %v4045_v3, %v2203_v6 }
 0x193   : > { %v2849_v53 = vpop.permute.xlu1 %2848 }
 0x194   : > { %v2851_v40 = vunpack.i.h.bf16 %v2849_v53  ;;  %v2850_v57 = vunpack.i.l.bf16 %v2849_v53  ;;  %2500 = vmatprep.subr.bf16.mxu0 %v2499_v30 }
 0x195   : > { %v2207_v32 = vpop.permute.xlu0 %2206 }
 0x196   : > { %v1321_v18 = vsel %vm398_vm6, %v1320_v41, %v2850_v57  ;;  %v1767_v48 = vsel %vm398_vm6, %v1766_v58, %v2851_v40  ;;  %v2237_v5 = vsel %vm388_vm1, %v2236_v55, %v2207_v32 }
 0x197   : > { %v2175_v45 = vpop.permute.xlu1 %2174  ;;  %v2272_v11 = vsel %vm2267_vm7, %v1321_v18, %v2257_v50  ;;  %v2274_v13 = vsel %vm2267_vm7, %v1767_v48, %v2263_v44 }
 0x198   : > { %v2501_v31 = vpack.c.bf16 %v2274_v13, %v2272_v11  ;;  %v2229_v60 = vsel %vm386_vm0, %v4059_v47, %v2175_v45  ;;  %v2276_v47 = vld [vmem:[%s4471_s1] sm:$0xff] }
 0x199   : > { %v2211_v36 = vpop.permute.xlu0 %2210 }
 0x19a   : > { %2502 = vmatpush1.bf16.msra.mxu0 %v2501_v31  ;;  %v2238_v56 = vsel %vm390_vm2, %v2237_v5, %v2211_v36 }
 0x19b   : > { %v2179_v27 = vpop.permute.xlu1 %2178 }
 0x19c   : > { %v2230_v3 = vsel %vm388_vm1, %v2229_v60, %v2179_v27 }
 0x19d   : > { %v2215_v10 = vpop.permute.xlu0 %2214 }
 0x19e   : > { %v2239_v15 = vsel %vm392_vm3, %v2238_v56, %v2215_v10 }
 0x19f   : > { %v2183_v16 = vpop.permute.xlu1 %2182 }
 0x1a0   : > { %v2231_v61 = vsel %vm390_vm2, %v2230_v3, %v2183_v16 }
 0x1a1   : > { %v2219_v39 = vpop.permute.xlu0 %2218 }
 0x1a2   : > { %v2240_v1 = vsel %vm394_vm4, %v2239_v15, %v2219_v39 }
 0x1a3   : > { %v2187_v33 = vpop.permute.xlu1 %2186 }
 0x1a4   : > { %v2232_v63 = vsel %vm392_vm3, %v2231_v61, %v2187_v33 }
 0x1a5   : > { %v2223_v28 = vpop.permute.xlu0 %2222 }
 0x1a6   : > { %v2241_v23 = vsel %vm396_vm5, %v2240_v1, %v2223_v28 }
 0x1a7   : > { %v2191_v22 = vpop.permute.xlu1 %2190 }
 0x1a8   : > { %v2233_v24 = vsel %vm394_vm4, %v2232_v63, %v2191_v22 }
 0x1a9   : > { %v2227_v59 = vpop.permute.xlu0 %2226 }
 0x1aa   : > { %v2242_v51 = vsel %vm398_vm6, %v2241_v23, %v2227_v59 }
 0x1ab   : > { %v2195_v35 = vpop.permute.xlu1 %2194  ;;  %2486 = vmatprep.subr.msk.mxu0 %vm2267_vm7, %v2242_v51 }
 0x1ac   : > { %v2234_v4 = vsel %vm396_vm5, %v2233_v24, %v2195_v35 }
 0x1af   : > { %v2199_v37 = vpop.permute.xlu1 %2198 }
 0x1b0   : > { %v2235_v0 = vsel %vm398_vm6, %v2234_v4, %v2199_v37 }
 0x1b1   : > { %2487 = vmatpush1.msk.msra.mxu0 %vm2267_vm7, %v2235_v0 }
 0x1b2   : > { %2488 = vmatmul.mubr.msk.f32.vlgmr.msra.gmra.mrb[0].mxu0 %vm2283_vm8, %v2276_v47 }
 0x1ba   : > { %v2281_v25 = vpop.permute.xlu0 %2280 }
 0x285   : > { %v2359_v46 = vpop.f32.mrb[0].mxu0 }
 0x286   : > { %v2360_v42 = vadd.f32 %v2359_v46, %v2281_v25  ;;  %v2361_v9 = vpop.f32.mrb[1].mxu0 }
 0x287   : > { %v2362_v12 = vadd.f32 %v2361_v9, %v2281_v25 }
 0x288   : > { %v2364_v14 = vmax.f32 %v2360_v42, 0.0 }
 0x289   : > { %v2365_v21 = vmax.f32 %v2362_v12, 0.0 }
 0x28a   : > { %2366 = vst [vmem:[%s177_s30] sm:$0xff] %v2364_v14 }
 0x28b   : > { %2367 = vst [vmem:[%s177_s30 + $0x8] sm:$0xff] %v2365_v21 }
 0x28c   : > { %2890 = shalt.err (!%p2887_p5)
}
 0x28d   : > { %s2891_s18 = scalar_lea.hbm %s4423_s7, 256  ;;  %s2895_s23 = scalar_lea.hbm %s4473_s3, 512 }
 0x28e   : > { %p2892_p6 = scmp.ne.s32.totalorder %s4423_s7, %s2891_s18  ;;  %p2896_p10 = scmp.lt.u32.totalorder %s4423_s7, %s4473_s3 }
 0x28f   : > { %p2897_p11 = scmp.lt.u32.totalorder %s2895_s23, %s2891_s18  ;;  %p2899_p13 = scmp.lt.u32.totalorder %s2891_s18, %s4423_s7 }
 0x290   : > { %p2893_p7 = pnand %p2892_p6, %p3031_p4 }
 0x291   : > { %p2898_p12 = por %p2897_p11, %p2896_p10 }
 0x292   : > { %p2894_p9 = pneg %p2893_p7 }
 0x293   : > { %p2900_p0 = por %p2899_p13, %p2898_p12 }
 0x295   : > { %p2901_p1 = pnand %p2900_p0, %p2894_p9 }
 0x297   : > { %2904 = shalt.err (!%p2901_p1)
}
 0x298   : > { %2504 = dma.vmem_to_hbm [thread:$0]  (%p3031_p4), %s4425_s4, 256, %s4423_s7, %s2369_s8  }
 0x299 PF: > { %p2510_p2 = scmp.ge.s32.totalorder %s2955_s17, 2  ;;  %s2397_s28 = sand.u32 1, %s2935_s12  }
 0x29a   : > { %s2398_s29 = scalar_lea.sflag [#allocation3], %s2397_s28 }
 0x29b   : > { %p2507_p3 = pnand %p2510_p2, %p3038_p8 }
 0x29d   : > { %2930 = dma.done.wait (!%p2507_p3), %s2398_s29, 256  }
 0x29e   : > { %2932 = vsyncadd (!%p2507_p3), %s2398_s29, 4294967040  ;;  %s16_s17 = sadd.s32 1, %s2955_s17   ;;  %s4551_s12 = smov %s2939_s13 }
 0x29f   : > { %p13_p5 = scmp.ge.s32.totalorder %s16_s17, 4   ;;  %s4552_s13 = smov %s2943_s14 }
 0x2a0   : > { %s4553_s14 = smov %s3044_s25  ;;  %s4554_s15 = smov %s2951_s16 }
 0x2a1   : > { %s4555_s16 = smov %s4557_s20  ;;  %15 = sbr.rel (!%p13_p5) target bundleno = 4 (0x4), region = 70 }
 0x2a8   :  { %2403 = vsyncpa [#allocation3], 1 }
 0x2a9   :  { %2405 = vsyncpa [#allocation3 + $0x1], 1 }

</bundles_post_ra>
